<compile_context>
chip_gen: v5e
topology: v5e:2x2
jax: 0.10.0
libtpu: 0.0.40
codegen_flags: <defaults>
</compile_context>

<pallas_src>
import functools

import jax
import jax.numpy as jnp
from jax.experimental import pallas as pl
from jax.experimental.pallas import tpu as pltpu

# ---------------- deterministic hyper-parameters (module __init__ kwargs) ----
WEIGHT_DICE = 1.0
WEIGHT_SC = 1.0
# soft_dice_kwargs
DICE_SMOOTH = 1e-5
DICE_DO_BG = False          # drop background (class 0) from the dice mean
DICE_BATCH_DICE = False     # per-sample dice: reduce over spatial axes only
# sc_kwargs
SC_K = 3                    # k x k neighbourhood window (k odd)
SC_ALPHA = 1.0              # scale on the spatial-coherence term
SC_DO_BG = False            # drop background class from the SC mean


def _dc_sc_kernel(logits_ref, target_ref, out_ref, *, B, C, H, W):
    """Per-sample block: logits (C,H,W), target (H,W) -> per-sample loss term."""
    x = logits_ref[...].astype(jnp.float32)          # (C, H, W) logits
    tgt = target_ref[...]                            # (H, W) int32 labels

    # ---- softmax over the class axis (softmax_helper_dim1) ------------------
    m = jnp.max(x, axis=0, keepdims=True)
    e = jnp.exp(x - m)
    inv = pl.reciprocal(jnp.sum(e, axis=0, keepdims=True), approx=False)
    probs = e * inv                                   # (C, H, W) f32

    dice_start = 0 if DICE_DO_BG else min(1, C - 1 if C > 1 else 0)
    sc_start = 0 if SC_DO_BG else min(1, C - 1 if C > 1 else 0)
    dice_classes = list(range(0 if DICE_DO_BG else 1, C))
    sc_classes = list(range(0 if SC_DO_BG else 1, C))

    # per-class boolean target masks (2-D; no (C,H,W) one-hot is materialized)
    cls_eq = {c: (tgt == c) for c in sorted(set(dice_classes) | set(sc_classes))}

    # ---- SoftDice (batch_dice=False): per-class masked 2-D reductions -------
    # 2*tp + fp + fn == sum_p + sum_y  (fp = sum_p - tp, fn = sum_y - tp)
    dice_sum = 0.0
    for c in dice_classes:
        mask_f = cls_eq[c].astype(jnp.float32)
        p_c = probs[c]
        tp_c = jnp.sum(p_c * mask_f)
        sum_p_c = jnp.sum(p_c)
        sum_y_c = jnp.sum(mask_f)
        nominator = 2.0 * tp_c + DICE_SMOOTH
        denominator = jnp.maximum(sum_p_c + sum_y_c + DICE_SMOOTH, 1e-8)
        dice_sum = dice_sum + nominator / denominator
    n_dice = max(len(dice_classes), 1)                # guard C == 1 degenerate
    dice_contrib = -dice_sum / float(B * n_dice)

    # ---- MultiClassOneVsRestSCLoss -------------------------------------------
    # TODO(synk): exact MultiClassOneVsRestSCLoss source is not available; it is
    # implemented as a one-vs-rest local structure-consistency loss: for every
    # in-bounds ordered pixel pair (i, j) with Chebyshev distance <= k//2,
    # penalize | |p_c(i)-p_c(j)| - |g_c(i)-g_c(j)| |, averaged, scaled by alpha.
    sc_contrib = 0.0
    if sc_classes:
        r = SC_K // 2
        n_cls = max(len(sc_classes), 1)
        pcl = probs[sc_start:] if not SC_DO_BG else probs   # (n_cls, H, W)

        row = jax.lax.broadcasted_iota(jnp.int32, (H, W), 0)
        col = jax.lax.broadcasted_iota(jnp.int32, (H, W), 1)

        # cached column-validity masks (convention-agnostic: rolled-iota test)
        col_valid_cache = {}

        def _col_valid(dx):
            if dx not in col_valid_cache:
                cr = pltpu.roll(col, dx % W, 1)
                col_valid_cache[dx] = (
                    jnp.abs(cr - col) == abs(dx)).astype(jnp.float32)
            return col_valid_cache[dx]

        # Half-plane offset set; the pairwise term is symmetric so the full
        # ordered-pair sum is exactly twice the half-plane sum.
        acc = jnp.zeros((H, W), jnp.float32)          # single elementwise acc
        total_pairs = 0
        for dy in range(0, r + 1):
            dx_list = [dx for dx in range(-r, r + 1) if (dy > 0 or dx > 0)]
            if not dx_list:
                continue
            # hoisted dy-roll (sublane) of probs / target / row-validity
            if dy == 0:
                pcl_dy, tgt_dy, vrow = pcl, tgt, None
            else:
                pcl_dy = pltpu.roll(pcl, dy % H, 1)
                tgt_dy = pltpu.roll(tgt, dy % H, 0)
                rr = pltpu.roll(row, dy % H, 0)
                vrow = (jnp.abs(rr - row) == dy).astype(jnp.float32)

            for dx in dx_list:
                if dx == 0:
                    p_n, tgt_n, vcol = pcl_dy, tgt_dy, None
                else:
                    p_n = pltpu.roll(pcl_dy, dx % W, 2)
                    tgt_n = pltpu.roll(tgt_dy, dx % W, 1)
                    vcol = _col_valid(dx)

                dp = jnp.abs(pcl - p_n)               # (n_cls, H, W), in [0,1]

                # ground-truth side via XOR of 2-D class compares:
                # |g_c(i)-g_c(j)| in {0,1}  =>  | dp - gdiff | = gdiff ? 1-dp : dp
                ctile = jnp.zeros((H, W), jnp.float32)
                for ci, c in enumerate(sc_classes):
                    gdiff = jnp.logical_xor(cls_eq[c], tgt_n == c)
                    dp_c = dp[ci]
                    ctile = ctile + jnp.where(gdiff, 1.0 - dp_c, dp_c)

                if vrow is None and vcol is None:
                    acc = acc + ctile
                elif vrow is None:
                    acc = acc + ctile * vcol
                elif vcol is None:
                    acc = acc + ctile * vrow
                else:
                    acc = acc + ctile * (vrow * vcol)

                total_pairs += 2 * (H - dy) * (W - abs(dx))

        total_pairs = max(total_pairs, 1)
        num_b = 2.0 * jnp.sum(acc)        # full ordered-pair sum via symmetry
        sc_contrib = SC_ALPHA * num_b / float(total_pairs * B * n_cls)

    total_b = WEIGHT_DICE * dice_contrib + WEIGHT_SC * sc_contrib
    # lane-dense (8,128) scalar broadcast store for this sample
    out_ref[...] = total_b * jnp.ones((8, 128), jnp.float32)


def _vmem_limit_bytes():
    # Size the scoped VMEM limit from the chip. On 64-MiB-VMEM parts (v7x) go
    # above cap//2 (~52 MiB) so the live f32 temporaries fit without spilling;
    # on 128-MiB parts (v5e/v6e) cap//2 = 64 MiB already leaves headroom.
    try:
        cap = pltpu.get_tpu_info().vmem_capacity_bytes
    except Exception:
        cap = 128 * 1024 * 1024
    if cap <= 64 * 1024 * 1024:
        return int(max(min(cap - 12 * 1024 * 1024, 52 * 1024 * 1024),
                       32 * 1024 * 1024))
    return int(min(cap // 2, 96 * 1024 * 1024))


def dc_and_sc_loss(net_output, target):
    """net_output: [B, C, H, W] float/bf16 logits; target: [B, H, W] int ids."""
    B, C, H, W = net_output.shape
    if target.dtype != jnp.int32:
        target = target.astype(jnp.int32)

    kernel = functools.partial(_dc_sc_kernel, B=B, C=C, H=H, W=W)
    out = pl.pallas_call(
        kernel,
        grid=(B,),
        out_shape=jax.ShapeDtypeStruct((B, 8, 128), jnp.float32),
        in_specs=[
            pl.BlockSpec((None, C, H, W), lambda b: (b, 0, 0, 0)),
            pl.BlockSpec((None, H, W), lambda b: (b, 0, 0)),
        ],
        out_specs=pl.BlockSpec((None, 8, 128), lambda b: (b, 0, 0)),
        compiler_params=pltpu.CompilerParams(
            dimension_semantics=("parallel",),
            vmem_limit_bytes=_vmem_limit_bytes(),
        ),
    )(net_output, target)
    # tiny final reduction over the per-sample contributions
    return jnp.sum(out[:, 0, 0])


if __name__ == "__main__":
    B, C, H, W = 2, 4, 16, 16
    key = jax.random.PRNGKey(0)
    k_logits, k_target = jax.random.split(key)
    net_output = jax.random.normal(k_logits, (B, C, H, W), dtype=jnp.float32)
    target = jax.random.randint(k_target, (B, H, W), 0, C, dtype=jnp.int32)

    loss = dc_and_sc_loss(net_output, target)
    jax.block_until_ready(loss)
    print("KERNEL_OK")
</pallas_src>

<mosaic_0001>
module attributes {stable_mosaic.version = 11 : i64} {
  func.func @_dc_sc_kernel(%arg0: i32, %arg1: memref<1x4x16x16xf32, #tpu.memory_space<vmem>>, %arg2: memref<1x16x16xi32, #tpu.memory_space<vmem>>, %arg3: memref<1x8x128xf32, #tpu.memory_space<vmem>>) attributes {dimension_semantics = [#tpu.dimension_semantics<parallel>], iteration_bounds = array<i64: 2>, scalar_prefetch = 0 : i64, scratch_operands = 0 : i64, tpu.core_type = #tpu.core_type<tc>, window_params = [{transform_indices = @transform_0, window_bounds = array<i64: 1, 4, 16, 16>}, {transform_indices = @transform_1, window_bounds = array<i64: 1, 16, 16>}, {transform_indices = @transform_2, window_bounds = array<i64: 1, 8, 128>}]} {
    %c0 = arith.constant 0 : index
    %c0_0 = arith.constant 0 : index
    %c0_1 = arith.constant 0 : index
    %c0_2 = arith.constant 0 : index
    %0 = vector.load %arg1[%c0, %c0_0, %c0_1, %c0_2] : memref<1x4x16x16xf32, #tpu.memory_space<vmem>>, vector<1x4x16x16xf32>
    %1 = vector.shape_cast %0 : vector<1x4x16x16xf32> to vector<4x16x16xf32>
    %c0_3 = arith.constant 0 : index
    %c0_4 = arith.constant 0 : index
    %c0_5 = arith.constant 0 : index
    %2 = vector.load %arg2[%c0_3, %c0_4, %c0_5] : memref<1x16x16xi32, #tpu.memory_space<vmem>>, vector<1x16x16xi32>
    %3 = vector.shape_cast %2 : vector<1x16x16xi32> to vector<16x16xi32>
    %cst = arith.constant dense<0xFF800000> : vector<16x16xf32>
    %4 = vector.multi_reduction <maximumf>, %1, %cst [0] : vector<4x16x16xf32> to vector<16x16xf32>
    %5 = vector.shape_cast %4 : vector<16x16xf32> to vector<1x16x16xf32>
    %6 = vector.broadcast %5 : vector<1x16x16xf32> to vector<4x16x16xf32>
    %7 = arith.subf %1, %6 : vector<4x16x16xf32>
    %8 = math.exp %7 : vector<4x16x16xf32>
    %cst_6 = arith.constant dense<0.000000e+00> : vector<16x16xf32>
    %9 = vector.multi_reduction <add>, %8, %cst_6 [0] : vector<4x16x16xf32> to vector<16x16xf32>
    %10 = vector.shape_cast %9 : vector<16x16xf32> to vector<1x16x16xf32>
    %11 = tpu.reciprocal %10 : vector<1x16x16xf32> -> vector<1x16x16xf32>
    %12 = vector.broadcast %11 : vector<1x16x16xf32> to vector<4x16x16xf32>
    %13 = arith.mulf %8, %12 : vector<4x16x16xf32>
    %c1_i32 = arith.constant 1 : i32
    %14 = vector.broadcast %c1_i32 : i32 to vector<16x16xi32>
    %15 = arith.cmpi eq, %3, %14 : vector<16x16xi32>
    %c2_i32 = arith.constant 2 : i32
    %16 = vector.broadcast %c2_i32 : i32 to vector<16x16xi32>
    %17 = arith.cmpi eq, %3, %16 : vector<16x16xi32>
    %c3_i32 = arith.constant 3 : i32
    %18 = vector.broadcast %c3_i32 : i32 to vector<16x16xi32>
    %19 = arith.cmpi eq, %3, %18 : vector<16x16xi32>
    %20 = arith.extui %15 : vector<16x16xi1> to vector<16x16xi32>
    %21 = arith.sitofp %20 : vector<16x16xi32> to vector<16x16xf32>
    %22 = vector.extract_strided_slice %13 {offsets = [1, 0, 0], sizes = [1, 16, 16], strides = [1, 1, 1]} : vector<4x16x16xf32> to vector<1x16x16xf32>
    %23 = vector.shape_cast %22 : vector<1x16x16xf32> to vector<16x16xf32>
    %24 = arith.mulf %23, %21 : vector<16x16xf32>
    %25 = vector.shape_cast %24 : vector<16x16xf32> to vector<1x16x16xf32>
    %cst_7 = arith.constant dense<0.000000e+00> : vector<1xf32>
    %26 = vector.multi_reduction <add>, %25, %cst_7 [1, 2] : vector<1x16x16xf32> to vector<1xf32>
    %27 = vector.shape_cast %26 : vector<1xf32> to vector<1x1x1xf32>
    %28 = vector.extract %27[0, 0, 0] : f32 from vector<1x1x1xf32>
    %29 = vector.shape_cast %23 : vector<16x16xf32> to vector<1x16x16xf32>
    %cst_8 = arith.constant dense<0.000000e+00> : vector<1xf32>
    %30 = vector.multi_reduction <add>, %29, %cst_8 [1, 2] : vector<1x16x16xf32> to vector<1xf32>
    %31 = vector.shape_cast %30 : vector<1xf32> to vector<1x1x1xf32>
    %32 = vector.extract %31[0, 0, 0] : f32 from vector<1x1x1xf32>
    %33 = vector.shape_cast %21 : vector<16x16xf32> to vector<1x16x16xf32>
    %cst_9 = arith.constant dense<0.000000e+00> : vector<1xf32>
    %34 = vector.multi_reduction <add>, %33, %cst_9 [1, 2] : vector<1x16x16xf32> to vector<1xf32>
    %35 = vector.shape_cast %34 : vector<1xf32> to vector<1x1x1xf32>
    %36 = vector.extract %35[0, 0, 0] : f32 from vector<1x1x1xf32>
    %cst_10 = arith.constant 2.000000e+00 : f32
    %37 = arith.mulf %cst_10, %28 : f32
    %cst_11 = arith.constant 9.99999974E-6 : f32
    %38 = arith.addf %37, %cst_11 : f32
    %39 = arith.addf %32, %36 : f32
    %cst_12 = arith.constant 9.99999974E-6 : f32
    %40 = arith.addf %39, %cst_12 : f32
    %cst_13 = arith.constant 9.99999993E-9 : f32
    %41 = arith.maximumf %40, %cst_13 : f32
    %42 = arith.divf %38, %41 : f32
    %cst_14 = arith.constant 0.000000e+00 : f32
    %43 = arith.addf %cst_14, %42 : f32
    %44 = arith.extui %17 : vector<16x16xi1> to vector<16x16xi32>
    %45 = arith.sitofp %44 : vector<16x16xi32> to vector<16x16xf32>
    %46 = vector.extract_strided_slice %13 {offsets = [2, 0, 0], sizes = [1, 16, 16], strides = [1, 1, 1]} : vector<4x16x16xf32> to vector<1x16x16xf32>
    %47 = vector.shape_cast %46 : vector<1x16x16xf32> to vector<16x16xf32>
    %48 = arith.mulf %47, %45 : vector<16x16xf32>
    %49 = vector.shape_cast %48 : vector<16x16xf32> to vector<1x16x16xf32>
    %cst_15 = arith.constant dense<0.000000e+00> : vector<1xf32>
    %50 = vector.multi_reduction <add>, %49, %cst_15 [1, 2] : vector<1x16x16xf32> to vector<1xf32>
    %51 = vector.shape_cast %50 : vector<1xf32> to vector<1x1x1xf32>
    %52 = vector.extract %51[0, 0, 0] : f32 from vector<1x1x1xf32>
    %53 = vector.shape_cast %47 : vector<16x16xf32> to vector<1x16x16xf32>
    %cst_16 = arith.constant dense<0.000000e+00> : vector<1xf32>
    %54 = vector.multi_reduction <add>, %53, %cst_16 [1, 2] : vector<1x16x16xf32> to vector<1xf32>
    %55 = vector.shape_cast %54 : vector<1xf32> to vector<1x1x1xf32>
    %56 = vector.extract %55[0, 0, 0] : f32 from vector<1x1x1xf32>
    %57 = vector.shape_cast %45 : vector<16x16xf32> to vector<1x16x16xf32>
    %cst_17 = arith.constant dense<0.000000e+00> : vector<1xf32>
    %58 = vector.multi_reduction <add>, %57, %cst_17 [1, 2] : vector<1x16x16xf32> to vector<1xf32>
    %59 = vector.shape_cast %58 : vector<1xf32> to vector<1x1x1xf32>
    %60 = vector.extract %59[0, 0, 0] : f32 from vector<1x1x1xf32>
    %cst_18 = arith.constant 2.000000e+00 : f32
    %61 = arith.mulf %cst_18, %52 : f32
    %cst_19 = arith.constant 9.99999974E-6 : f32
    %62 = arith.addf %61, %cst_19 : f32
    %63 = arith.addf %56, %60 : f32
    %cst_20 = arith.constant 9.99999974E-6 : f32
    %64 = arith.addf %63, %cst_20 : f32
    %cst_21 = arith.constant 9.99999993E-9 : f32
    %65 = arith.maximumf %64, %cst_21 : f32
    %66 = arith.divf %62, %65 : f32
    %67 = arith.addf %43, %66 : f32
    %68 = arith.extui %19 : vector<16x16xi1> to vector<16x16xi32>
    %69 = arith.sitofp %68 : vector<16x16xi32> to vector<16x16xf32>
    %70 = vector.extract_strided_slice %13 {offsets = [3, 0, 0], sizes = [1, 16, 16], strides = [1, 1, 1]} : vector<4x16x16xf32> to vector<1x16x16xf32>
    %71 = vector.shape_cast %70 : vector<1x16x16xf32> to vector<16x16xf32>
    %72 = arith.mulf %71, %69 : vector<16x16xf32>
    %73 = vector.shape_cast %72 : vector<16x16xf32> to vector<1x16x16xf32>
    %cst_22 = arith.constant dense<0.000000e+00> : vector<1xf32>
    %74 = vector.multi_reduction <add>, %73, %cst_22 [1, 2] : vector<1x16x16xf32> to vector<1xf32>
    %75 = vector.shape_cast %74 : vector<1xf32> to vector<1x1x1xf32>
    %76 = vector.extract %75[0, 0, 0] : f32 from vector<1x1x1xf32>
    %77 = vector.shape_cast %71 : vector<16x16xf32> to vector<1x16x16xf32>
    %cst_23 = arith.constant dense<0.000000e+00> : vector<1xf32>
    %78 = vector.multi_reduction <add>, %77, %cst_23 [1, 2] : vector<1x16x16xf32> to vector<1xf32>
    %79 = vector.shape_cast %78 : vector<1xf32> to vector<1x1x1xf32>
    %80 = vector.extract %79[0, 0, 0] : f32 from vector<1x1x1xf32>
    %81 = vector.shape_cast %69 : vector<16x16xf32> to vector<1x16x16xf32>
    %cst_24 = arith.constant dense<0.000000e+00> : vector<1xf32>
    %82 = vector.multi_reduction <add>, %81, %cst_24 [1, 2] : vector<1x16x16xf32> to vector<1xf32>
    %83 = vector.shape_cast %82 : vector<1xf32> to vector<1x1x1xf32>
    %84 = vector.extract %83[0, 0, 0] : f32 from vector<1x1x1xf32>
    %cst_25 = arith.constant 2.000000e+00 : f32
    %85 = arith.mulf %cst_25, %76 : f32
    %cst_26 = arith.constant 9.99999974E-6 : f32
    %86 = arith.addf %85, %cst_26 : f32
    %87 = arith.addf %80, %84 : f32
    %cst_27 = arith.constant 9.99999974E-6 : f32
    %88 = arith.addf %87, %cst_27 : f32
    %cst_28 = arith.constant 9.99999993E-9 : f32
    %89 = arith.maximumf %88, %cst_28 : f32
    %90 = arith.divf %86, %89 : f32
    %91 = arith.addf %67, %90 : f32
    %cst_29 = arith.constant 0.000000e+00 : f32
    %92 = arith.subf %cst_29, %91 : f32
    %cst_30 = arith.constant 6.000000e+00 : f32
    %93 = arith.divf %92, %cst_30 : f32
    %94 = vector.extract_strided_slice %13 {offsets = [1, 0, 0], sizes = [3, 16, 16], strides = [1, 1, 1]} : vector<4x16x16xf32> to vector<3x16x16xf32>
    %95 = tpu.iota {dimensions = array<i32: 0>} : vector<16x16xi32>
    %96 = tpu.iota {dimensions = array<i32: 1>} : vector<16x16xi32>
    %cst_31 = arith.constant 0.000000e+00 : f32
    %97 = vector.broadcast %cst_31 : f32 to vector<16x16xf32>
    %c1_i32_32 = arith.constant 1 : i32
    %98 = tpu.dynamic_rotate %94 by %c1_i32_32 dim 2 : vector<3x16x16xf32>, i32 -> vector<3x16x16xf32>
    %c1_i32_33 = arith.constant 1 : i32
    %99 = tpu.dynamic_rotate %3 by %c1_i32_33 dim 1 : vector<16x16xi32>, i32 -> vector<16x16xi32>
    %c1_i32_34 = arith.constant 1 : i32
    %100 = tpu.dynamic_rotate %96 by %c1_i32_34 dim 1 : vector<16x16xi32>, i32 -> vector<16x16xi32>
    %101 = arith.subi %100, %96 : vector<16x16xi32>
    %102 = math.absi %101 : vector<16x16xi32>
    %c1_i32_35 = arith.constant 1 : i32
    %103 = vector.broadcast %c1_i32_35 : i32 to vector<16x16xi32>
    %104 = arith.cmpi eq, %102, %103 : vector<16x16xi32>
    %105 = arith.extui %104 : vector<16x16xi1> to vector<16x16xi32>
    %106 = arith.sitofp %105 : vector<16x16xi32> to vector<16x16xf32>
    %107 = arith.subf %94, %98 : vector<3x16x16xf32>
    %108 = math.absf %107 : vector<3x16x16xf32>
    %cst_36 = arith.constant 0.000000e+00 : f32
    %109 = vector.broadcast %cst_36 : f32 to vector<16x16xf32>
    %c1_i32_37 = arith.constant 1 : i32
    %110 = vector.broadcast %c1_i32_37 : i32 to vector<16x16xi32>
    %111 = arith.cmpi eq, %99, %110 : vector<16x16xi32>
    %112 = arith.xori %15, %111 : vector<16x16xi1>
    %113 = vector.extract_strided_slice %108 {offsets = [0, 0, 0], sizes = [1, 16, 16], strides = [1, 1, 1]} : vector<3x16x16xf32> to vector<1x16x16xf32>
    %114 = vector.shape_cast %113 : vector<1x16x16xf32> to vector<16x16xf32>
    %cst_38 = arith.constant 1.000000e+00 : f32
    %115 = vector.broadcast %cst_38 : f32 to vector<16x16xf32>
    %116 = arith.subf %115, %114 : vector<16x16xf32>
    %117 = arith.select %112, %116, %114 : vector<16x16xi1>, vector<16x16xf32>
    %118 = arith.addf %109, %117 : vector<16x16xf32>
    %c2_i32_39 = arith.constant 2 : i32
    %119 = vector.broadcast %c2_i32_39 : i32 to vector<16x16xi32>
    %120 = arith.cmpi eq, %99, %119 : vector<16x16xi32>
    %121 = arith.xori %17, %120 : vector<16x16xi1>
    %122 = vector.extract_strided_slice %108 {offsets = [1, 0, 0], sizes = [1, 16, 16], strides = [1, 1, 1]} : vector<3x16x16xf32> to vector<1x16x16xf32>
    %123 = vector.shape_cast %122 : vector<1x16x16xf32> to vector<16x16xf32>
    %cst_40 = arith.constant 1.000000e+00 : f32
    %124 = vector.broadcast %cst_40 : f32 to vector<16x16xf32>
    %125 = arith.subf %124, %123 : vector<16x16xf32>
    %126 = arith.select %121, %125, %123 : vector<16x16xi1>, vector<16x16xf32>
    %127 = arith.addf %118, %126 : vector<16x16xf32>
    %c3_i32_41 = arith.constant 3 : i32
    %128 = vector.broadcast %c3_i32_41 : i32 to vector<16x16xi32>
    %129 = arith.cmpi eq, %99, %128 : vector<16x16xi32>
    %130 = arith.xori %19, %129 : vector<16x16xi1>
    %131 = vector.extract_strided_slice %108 {offsets = [2, 0, 0], sizes = [1, 16, 16], strides = [1, 1, 1]} : vector<3x16x16xf32> to vector<1x16x16xf32>
    %132 = vector.shape_cast %131 : vector<1x16x16xf32> to vector<16x16xf32>
    %cst_42 = arith.constant 1.000000e+00 : f32
    %133 = vector.broadcast %cst_42 : f32 to vector<16x16xf32>
    %134 = arith.subf %133, %132 : vector<16x16xf32>
    %135 = arith.select %130, %134, %132 : vector<16x16xi1>, vector<16x16xf32>
    %136 = arith.addf %127, %135 : vector<16x16xf32>
    %137 = arith.mulf %136, %106 : vector<16x16xf32>
    %138 = arith.addf %97, %137 : vector<16x16xf32>
    %c1_i32_43 = arith.constant 1 : i32
    %139 = tpu.dynamic_rotate %94 by %c1_i32_43 dim 1 : vector<3x16x16xf32>, i32 -> vector<3x16x16xf32>
    %c1_i32_44 = arith.constant 1 : i32
    %140 = tpu.dynamic_rotate %3 by %c1_i32_44 dim 0 : vector<16x16xi32>, i32 -> vector<16x16xi32>
    %c1_i32_45 = arith.constant 1 : i32
    %141 = tpu.dynamic_rotate %95 by %c1_i32_45 dim 0 : vector<16x16xi32>, i32 -> vector<16x16xi32>
    %142 = arith.subi %141, %95 : vector<16x16xi32>
    %143 = math.absi %142 : vector<16x16xi32>
    %c1_i32_46 = arith.constant 1 : i32
    %144 = vector.broadcast %c1_i32_46 : i32 to vector<16x16xi32>
    %145 = arith.cmpi eq, %143, %144 : vector<16x16xi32>
    %146 = arith.extui %145 : vector<16x16xi1> to vector<16x16xi32>
    %147 = arith.sitofp %146 : vector<16x16xi32> to vector<16x16xf32>
    %c15_i32 = arith.constant 15 : i32
    %148 = tpu.dynamic_rotate %139 by %c15_i32 dim 2 : vector<3x16x16xf32>, i32 -> vector<3x16x16xf32>
    %c15_i32_47 = arith.constant 15 : i32
    %149 = tpu.dynamic_rotate %140 by %c15_i32_47 dim 1 : vector<16x16xi32>, i32 -> vector<16x16xi32>
    %c15_i32_48 = arith.constant 15 : i32
    %150 = tpu.dynamic_rotate %96 by %c15_i32_48 dim 1 : vector<16x16xi32>, i32 -> vector<16x16xi32>
    %151 = arith.subi %150, %96 : vector<16x16xi32>
    %152 = math.absi %151 : vector<16x16xi32>
    %c1_i32_49 = arith.constant 1 : i32
    %153 = vector.broadcast %c1_i32_49 : i32 to vector<16x16xi32>
    %154 = arith.cmpi eq, %152, %153 : vector<16x16xi32>
    %155 = arith.extui %154 : vector<16x16xi1> to vector<16x16xi32>
    %156 = arith.sitofp %155 : vector<16x16xi32> to vector<16x16xf32>
    %157 = arith.subf %94, %148 : vector<3x16x16xf32>
    %158 = math.absf %157 : vector<3x16x16xf32>
    %cst_50 = arith.constant 0.000000e+00 : f32
    %159 = vector.broadcast %cst_50 : f32 to vector<16x16xf32>
    %c1_i32_51 = arith.constant 1 : i32
    %160 = vector.broadcast %c1_i32_51 : i32 to vector<16x16xi32>
    %161 = arith.cmpi eq, %149, %160 : vector<16x16xi32>
    %162 = arith.xori %15, %161 : vector<16x16xi1>
    %163 = vector.extract_strided_slice %158 {offsets = [0, 0, 0], sizes = [1, 16, 16], strides = [1, 1, 1]} : vector<3x16x16xf32> to vector<1x16x16xf32>
    %164 = vector.shape_cast %163 : vector<1x16x16xf32> to vector<16x16xf32>
    %cst_52 = arith.constant 1.000000e+00 : f32
    %165 = vector.broadcast %cst_52 : f32 to vector<16x16xf32>
    %166 = arith.subf %165, %164 : vector<16x16xf32>
    %167 = arith.select %162, %166, %164 : vector<16x16xi1>, vector<16x16xf32>
    %168 = arith.addf %159, %167 : vector<16x16xf32>
    %c2_i32_53 = arith.constant 2 : i32
    %169 = vector.broadcast %c2_i32_53 : i32 to vector<16x16xi32>
    %170 = arith.cmpi eq, %149, %169 : vector<16x16xi32>
    %171 = arith.xori %17, %170 : vector<16x16xi1>
    %172 = vector.extract_strided_slice %158 {offsets = [1, 0, 0], sizes = [1, 16, 16], strides = [1, 1, 1]} : vector<3x16x16xf32> to vector<1x16x16xf32>
    %173 = vector.shape_cast %172 : vector<1x16x16xf32> to vector<16x16xf32>
    %cst_54 = arith.constant 1.000000e+00 : f32
    %174 = vector.broadcast %cst_54 : f32 to vector<16x16xf32>
    %175 = arith.subf %174, %173 : vector<16x16xf32>
    %176 = arith.select %171, %175, %173 : vector<16x16xi1>, vector<16x16xf32>
    %177 = arith.addf %168, %176 : vector<16x16xf32>
    %c3_i32_55 = arith.constant 3 : i32
    %178 = vector.broadcast %c3_i32_55 : i32 to vector<16x16xi32>
    %179 = arith.cmpi eq, %149, %178 : vector<16x16xi32>
    %180 = arith.xori %19, %179 : vector<16x16xi1>
    %181 = vector.extract_strided_slice %158 {offsets = [2, 0, 0], sizes = [1, 16, 16], strides = [1, 1, 1]} : vector<3x16x16xf32> to vector<1x16x16xf32>
    %182 = vector.shape_cast %181 : vector<1x16x16xf32> to vector<16x16xf32>
    %cst_56 = arith.constant 1.000000e+00 : f32
    %183 = vector.broadcast %cst_56 : f32 to vector<16x16xf32>
    %184 = arith.subf %183, %182 : vector<16x16xf32>
    %185 = arith.select %180, %184, %182 : vector<16x16xi1>, vector<16x16xf32>
    %186 = arith.addf %177, %185 : vector<16x16xf32>
    %187 = arith.mulf %147, %156 : vector<16x16xf32>
    %188 = arith.mulf %186, %187 : vector<16x16xf32>
    %189 = arith.addf %138, %188 : vector<16x16xf32>
    %190 = arith.subf %94, %139 : vector<3x16x16xf32>
    %191 = math.absf %190 : vector<3x16x16xf32>
    %cst_57 = arith.constant 0.000000e+00 : f32
    %192 = vector.broadcast %cst_57 : f32 to vector<16x16xf32>
    %c1_i32_58 = arith.constant 1 : i32
    %193 = vector.broadcast %c1_i32_58 : i32 to vector<16x16xi32>
    %194 = arith.cmpi eq, %140, %193 : vector<16x16xi32>
    %195 = arith.xori %15, %194 : vector<16x16xi1>
    %196 = vector.extract_strided_slice %191 {offsets = [0, 0, 0], sizes = [1, 16, 16], strides = [1, 1, 1]} : vector<3x16x16xf32> to vector<1x16x16xf32>
    %197 = vector.shape_cast %196 : vector<1x16x16xf32> to vector<16x16xf32>
    %cst_59 = arith.constant 1.000000e+00 : f32
    %198 = vector.broadcast %cst_59 : f32 to vector<16x16xf32>
    %199 = arith.subf %198, %197 : vector<16x16xf32>
    %200 = arith.select %195, %199, %197 : vector<16x16xi1>, vector<16x16xf32>
    %201 = arith.addf %192, %200 : vector<16x16xf32>
    %c2_i32_60 = arith.constant 2 : i32
    %202 = vector.broadcast %c2_i32_60 : i32 to vector<16x16xi32>
    %203 = arith.cmpi eq, %140, %202 : vector<16x16xi32>
    %204 = arith.xori %17, %203 : vector<16x16xi1>
    %205 = vector.extract_strided_slice %191 {offsets = [1, 0, 0], sizes = [1, 16, 16], strides = [1, 1, 1]} : vector<3x16x16xf32> to vector<1x16x16xf32>
    %206 = vector.shape_cast %205 : vector<1x16x16xf32> to vector<16x16xf32>
    %cst_61 = arith.constant 1.000000e+00 : f32
    %207 = vector.broadcast %cst_61 : f32 to vector<16x16xf32>
    %208 = arith.subf %207, %206 : vector<16x16xf32>
    %209 = arith.select %204, %208, %206 : vector<16x16xi1>, vector<16x16xf32>
    %210 = arith.addf %201, %209 : vector<16x16xf32>
    %c3_i32_62 = arith.constant 3 : i32
    %211 = vector.broadcast %c3_i32_62 : i32 to vector<16x16xi32>
    %212 = arith.cmpi eq, %140, %211 : vector<16x16xi32>
    %213 = arith.xori %19, %212 : vector<16x16xi1>
    %214 = vector.extract_strided_slice %191 {offsets = [2, 0, 0], sizes = [1, 16, 16], strides = [1, 1, 1]} : vector<3x16x16xf32> to vector<1x16x16xf32>
    %215 = vector.shape_cast %214 : vector<1x16x16xf32> to vector<16x16xf32>
    %cst_63 = arith.constant 1.000000e+00 : f32
    %216 = vector.broadcast %cst_63 : f32 to vector<16x16xf32>
    %217 = arith.subf %216, %215 : vector<16x16xf32>
    %218 = arith.select %213, %217, %215 : vector<16x16xi1>, vector<16x16xf32>
    %219 = arith.addf %210, %218 : vector<16x16xf32>
    %220 = arith.mulf %219, %147 : vector<16x16xf32>
    %221 = arith.addf %189, %220 : vector<16x16xf32>
    %c1_i32_64 = arith.constant 1 : i32
    %222 = tpu.dynamic_rotate %139 by %c1_i32_64 dim 2 : vector<3x16x16xf32>, i32 -> vector<3x16x16xf32>
    %c1_i32_65 = arith.constant 1 : i32
    %223 = tpu.dynamic_rotate %140 by %c1_i32_65 dim 1 : vector<16x16xi32>, i32 -> vector<16x16xi32>
    %224 = arith.subf %94, %222 : vector<3x16x16xf32>
    %225 = math.absf %224 : vector<3x16x16xf32>
    %cst_66 = arith.constant 0.000000e+00 : f32
    %226 = vector.broadcast %cst_66 : f32 to vector<16x16xf32>
    %c1_i32_67 = arith.constant 1 : i32
    %227 = vector.broadcast %c1_i32_67 : i32 to vector<16x16xi32>
    %228 = arith.cmpi eq, %223, %227 : vector<16x16xi32>
    %229 = arith.xori %15, %228 : vector<16x16xi1>
    %230 = vector.extract_strided_slice %225 {offsets = [0, 0, 0], sizes = [1, 16, 16], strides = [1, 1, 1]} : vector<3x16x16xf32> to vector<1x16x16xf32>
    %231 = vector.shape_cast %230 : vector<1x16x16xf32> to vector<16x16xf32>
    %cst_68 = arith.constant 1.000000e+00 : f32
    %232 = vector.broadcast %cst_68 : f32 to vector<16x16xf32>
    %233 = arith.subf %232, %231 : vector<16x16xf32>
    %234 = arith.select %229, %233, %231 : vector<16x16xi1>, vector<16x16xf32>
    %235 = arith.addf %226, %234 : vector<16x16xf32>
    %c2_i32_69 = arith.constant 2 : i32
    %236 = vector.broadcast %c2_i32_69 : i32 to vector<16x16xi32>
    %237 = arith.cmpi eq, %223, %236 : vector<16x16xi32>
    %238 = arith.xori %17, %237 : vector<16x16xi1>
    %239 = vector.extract_strided_slice %225 {offsets = [1, 0, 0], sizes = [1, 16, 16], strides = [1, 1, 1]} : vector<3x16x16xf32> to vector<1x16x16xf32>
    %240 = vector.shape_cast %239 : vector<1x16x16xf32> to vector<16x16xf32>
    %cst_70 = arith.constant 1.000000e+00 : f32
    %241 = vector.broadcast %cst_70 : f32 to vector<16x16xf32>
    %242 = arith.subf %241, %240 : vector<16x16xf32>
    %243 = arith.select %238, %242, %240 : vector<16x16xi1>, vector<16x16xf32>
    %244 = arith.addf %235, %243 : vector<16x16xf32>
    %c3_i32_71 = arith.constant 3 : i32
    %245 = vector.broadcast %c3_i32_71 : i32 to vector<16x16xi32>
    %246 = arith.cmpi eq, %223, %245 : vector<16x16xi32>
    %247 = arith.xori %19, %246 : vector<16x16xi1>
    %248 = vector.extract_strided_slice %225 {offsets = [2, 0, 0], sizes = [1, 16, 16], strides = [1, 1, 1]} : vector<3x16x16xf32> to vector<1x16x16xf32>
    %249 = vector.shape_cast %248 : vector<1x16x16xf32> to vector<16x16xf32>
    %cst_72 = arith.constant 1.000000e+00 : f32
    %250 = vector.broadcast %cst_72 : f32 to vector<16x16xf32>
    %251 = arith.subf %250, %249 : vector<16x16xf32>
    %252 = arith.select %247, %251, %249 : vector<16x16xi1>, vector<16x16xf32>
    %253 = arith.addf %244, %252 : vector<16x16xf32>
    %254 = arith.mulf %147, %106 : vector<16x16xf32>
    %255 = arith.mulf %253, %254 : vector<16x16xf32>
    %256 = arith.addf %221, %255 : vector<16x16xf32>
    %257 = vector.shape_cast %256 : vector<16x16xf32> to vector<1x16x16xf32>
    %cst_73 = arith.constant dense<0.000000e+00> : vector<1xf32>
    %258 = vector.multi_reduction <add>, %257, %cst_73 [1, 2] : vector<1x16x16xf32> to vector<1xf32>
    %259 = vector.shape_cast %258 : vector<1xf32> to vector<1x1x1xf32>
    %260 = vector.extract %259[0, 0, 0] : f32 from vector<1x1x1xf32>
    %cst_74 = arith.constant 2.000000e+00 : f32
    %261 = arith.mulf %cst_74, %260 : f32
    %cst_75 = arith.constant 1.000000e+00 : f32
    %262 = arith.mulf %cst_75, %261 : f32
    %cst_76 = arith.constant 1.116000e+04 : f32
    %263 = arith.divf %262, %cst_76 : f32
    %cst_77 = arith.constant 1.000000e+00 : f32
    %264 = arith.mulf %cst_77, %93 : f32
    %cst_78 = arith.constant 1.000000e+00 : f32
    %265 = arith.mulf %cst_78, %263 : f32
    %266 = arith.addf %264, %265 : f32
    %cst_79 = arith.constant 1.000000e+00 : f32
    %267 = vector.broadcast %cst_79 : f32 to vector<8x128xf32>
    %268 = vector.broadcast %266 : f32 to vector<8x128xf32>
    %269 = arith.mulf %268, %267 : vector<8x128xf32>
    %c0_80 = arith.constant 0 : index
    %c0_81 = arith.constant 0 : index
    %c0_82 = arith.constant 0 : index
    %270 = vector.load %arg3[%c0_80, %c0_81, %c0_82] : memref<1x8x128xf32, #tpu.memory_space<vmem>>, vector<1x8x128xf32>
    %271 = vector.shape_cast %270 : vector<1x8x128xf32> to vector<8x128xf32>
    %272 = vector.shape_cast %269 : vector<8x128xf32> to vector<1x8x128xf32>
    tpu.vector_store %arg3[%c0_80, %c0_81, %c0_82], %272 {strides = array<i32>} : memref<1x8x128xf32, #tpu.memory_space<vmem>>, vector<1x8x128xf32>,
    return
  }
  func.func @transform_0(%arg0: i32) -> (i32, i32, i32, i32) {
    %c0_i32 = arith.constant 0 : i32
    %c0_i32_0 = arith.constant 0 : i32
    %c0_i32_1 = arith.constant 0 : i32
    %c0_i32_2 = arith.constant 0 : i32
    return %arg0, %c0_i32, %c0_i32_0, %c0_i32_1 : i32, i32, i32, i32
  }
  func.func @transform_1(%arg0: i32) -> (i32, i32, i32) {
    %c0_i32 = arith.constant 0 : i32
    %c0_i32_0 = arith.constant 0 : i32
    %c0_i32_1 = arith.constant 0 : i32
    return %arg0, %c0_i32, %c0_i32_0 : i32, i32, i32
  }
  func.func @transform_2(%arg0: i32) -> (i32, i32, i32) {
    %c0_i32 = arith.constant 0 : i32
    %c0_i32_0 = arith.constant 0 : i32
    %c0_i32_1 = arith.constant 0 : i32
    return %arg0, %c0_i32, %c0_i32_0 : i32, i32, i32
  }
}

</mosaic_0001>

<bundles_post_ra>
// kernel: tpu_custom_call.1
= control target key start
LH: loop header
LB: loop body
LE: loop exit
PB: predicated region body
PF: predicated region fallthrough
CT: control target
= control target key end

     0   :  { %s2205_s0 = inlined_call_operand.hbm [shape: f32[2,4,16,16], index: 0, kind: input, shape index: {}]   ;;  %s2206_s1 = inlined_call_operand.hbm [shape: s32[2,16,16], index: 1, kind: input, shape index: {}]   ;;  %s2207_s2 = inlined_call_operand.hbm [shape: f32[2,8,128], index: 2, kind: output, shape index: {}]  }
   0x1   :  { %2209 = sst [smem:[#allocation11_spill]] %s2205_s0 }
   0x2   :  { %7 = vsyncpa [#allocation3], 0 }
   0x3   :  { %9 = vsyncpa [#allocation3 + $0x1], 0 }
   0x4   :  { %10 = vsyncpa [#allocation6], 0 }
   0x5   :  { %12 = vsyncpa [#allocation6 + $0x1], 0 }
   0x6   :  { %13 = vsyncpa [#allocation4], 0 }
   0x7   :  { %15 = vsyncpa [#allocation4 + $0x1], 0  ;;  %s1442_s9 = smov 0   ;;  %s1444_s10 = smov 0  }
   0x8   :  { %s1446_s11 = smov 0   ;;  %s1448_s12 = smov 0  }
   0x9 LB: > { %s1463_s13 = sadd.s32 4294967295, %s1413_s12   ;;  %s1131_s14 = sadd.s32 4294967294, %s1413_s12   ;;  %s1413_s12 = sphi %s1448_s12, %s2223_s12   ;;  %s1409_s11 = sphi %s1446_s11, %s2222_s11   ;;  %s1405_s10 = sphi %s1444_s10, %s2221_s10   ;;  %s1401_s9 = sphi %s1442_s9, %s2220_s9  }
   0xa   : > { %s1467_s15 = sadd.s32 1, %s1413_s12   ;;  %s28_s16 = sadd.s32 1, %s1409_s11 }
   0xb   : > { %s25_s17 = ssub.s32 %s1413_s12, %s1467_s15  ;;  %p35_p0 = scmp.ne.s32.totalorder %s1409_s11, %s1405_s10 }
   0xc   : > { %p26_p1 = scmp.eq.s32.totalorder %s25_s17, 0  ;;  %p36_p2 = scmp.eq.s32.totalorder %s1413_s12, 0 }
   0xd   : > { %p41_p3 = scmp.ne.s32.totalorder %s1405_s10, %s1401_s9  ;;  %p42_p4 = scmp.eq.s32.totalorder %s1463_s13, 0 }
   0xe   : > { %s1479_s18 = scalar_select %p26_p1, %s1409_s11, %s28_s16  }
   0xf   : > { %p1481_p5 = por %p36_p2, %p35_p0  ;;  %p1485_p6 = por %p42_p4, %p41_p3 }
  0x10   : > { %p91_p7 = scmp.eq.s32.totalorder %s1463_s13, 1  ;;  %p97_p8 = scmp.eq.s32.totalorder %s1131_s14, 1 }
  0x11   : > { %p1207_p10 = scmp.lt.s32.totalorder %s1413_s12, 2  ;;  %s1501_s23 = sand.u32 1, %s1409_s11  }
  0x12   : > { %p1492_p11 = por %p91_p7, %p35_p0  ;;  %p1496_p12 = por %p97_p8, %p41_p3 }
  0x13   : > { %s1158_s24 = sshll.u32 %s1413_s12, 6  ;;  %s1134_s25 = sshll.u32 %s1501_s23, 6 }
  0x14   : > { %s2214_s0 = sld [smem:[#allocation11_spill]]  ;;  %s121_s30 = scalar_lea.vmem [#allocation2], %s1134_s25 }
  0x15   : > { %s129_s3 = sshll.u32 %s121_s30, 4  ;;  %p1510_p13 = pnand %p1207_p10, %p1481_p5  ;;  %s130_s3 = int_to_ptr.vmem [resolvable:$true] %s129_s3 }
  0x16   : > { %p1140_p0 = scmp.ge.s32.totalorder %s1413_s12, 1  ;;  %p159_p1 = scmp.lt.s32.totalorder %s1413_s12, 3 }
  0x17   : > { %s118_s5 = scalar_lea.sflag [#allocation3], %s1501_s23  ;;  %p1287_p3 = pneg %p1510_p13 }
  0x1a   : > { %s126_s28 = scalar_lea.hbm %s2214_s0, %s1158_s24  ;;  %s1290_s16 = scalar_lea.hbm %s2214_s0, 128 }
  0x1b   : > { %s127_s29 = sshll.u32 %s126_s28, 4  ;;  %s128_s29 = int_to_ptr.hbm [resolvable:$true] %s127_s29 }
  0x1c   : > { %s1283_s6 = sshra.s32 %s128_s29, 4  ;;  %s1284_s6 = int_to_ptr.hbm [resolvable:$true] %s1283_s6 }
  0x1d   : > { %s1285_s7 = scalar_lea.hbm %s1284_s6, 64  ;;  %p1291_p5 = scmp.lt.s32.totalorder %s1284_s6, %s2214_s0 }
  0x1e   : > { %p1286_p2 = scmp.ne.s32.totalorder %s1284_s6, %s1285_s7  ;;  %p1292_p8 = scmp.lt.s32.totalorder %s1290_s16, %s1285_s7 }
  0x20   : > { %p1288_p4 = pnand %p1287_p3, %p1286_p2  ;;  %p1293_p10 = por %p1292_p8, %p1291_p5 }
  0x22   : > { %p1289_p7 = pneg %p1288_p4 }
  0x24   : > { %p1294_p9 = pnand %p1293_p10, %p1289_p7 }
  0x26   : > { %1297 = shalt.err (!%p1294_p9)
}
  0x27   : > { %s1415_s24 = smov 128   ;;  %s1416_s25 = smov 8  }
  0x28   : > { %1199 = dma.hbm_to_vmem [thread:$0]  (!%p1510_p13), %s128_s29, 1024, %s130_s3, %s118_s5, %s1415_s24, %s1415_s24, %s1416_s25  }
  0x29   : > { %p1534_p2 = pnand %p1140_p0, %p159_p1  ;;  %s1137_s27 = sshll.u32 %s1501_s23, 4 }
  0x2a   : > { %s1159_s28 = sshll.u32 %s1413_s12, 4  ;;  %s143_s14 = scalar_lea.vmem [#allocation5], %s1137_s27 }
  0x2b   : > { %s148_s7 = scalar_lea.hbm %s2206_s1, %s1159_s28  ;;  %s151_s16 = sshll.u32 %s143_s14, 4  ;;  %s152_s16 = int_to_ptr.vmem [resolvable:$true] %s151_s16 }
  0x2c   : > { %s149_s8 = sshll.u32 %s148_s7, 4  ;;  %s140_s17 = scalar_lea.sflag [#allocation6], %s1501_s23  ;;  %s150_s8 = int_to_ptr.hbm [resolvable:$true] %s149_s8 }
  0x2d   : > { %s1313_s19 = sshra.s32 %s150_s8, 4  ;;  %s1320_s0 = scalar_lea.hbm %s2206_s1, 32  ;;  %s1314_s19 = int_to_ptr.hbm [resolvable:$true] %s1313_s19 }
  0x2e   : > { %s1315_s29 = scalar_lea.hbm %s1314_s19, 16  ;;  %p1321_p4 = scmp.lt.s32.totalorder %s1314_s19, %s2206_s1 }
  0x2f   : > { %p1316_p9 = scmp.ne.s32.totalorder %s1314_s19, %s1315_s29  ;;  %p1322_p7 = scmp.lt.s32.totalorder %s1320_s0, %s1315_s29 }
  0x31   : > { %p1318_p0 = pnand %p1316_p9, %p1287_p3  ;;  %p1323_p5 = por %p1322_p7, %p1321_p4 }
  0x33   : > { %p1319_p1 = pneg %p1318_p0 }
  0x35   : > { %p1324_p8 = pnand %p1323_p5, %p1319_p1 }
  0x37   : > { %1327 = shalt.err (!%p1324_p8)
}
  0x38   : > { %1202 = dma.hbm_to_vmem [thread:$0]  (!%p1510_p13), %s150_s8, 256, %s152_s16, %s140_s17, %s1415_s24, %s1415_s24, %s1416_s25  }
  0x39   : > { %163 = sbr.rel (%p1534_p2) target bundleno = 940 (0x3ac), region = 28  ;;  %s1558_s23 = sand.u32 (!%p1534_p2), 1, %s1405_s10  }
  0x3a   : > { %s1141_s27 = sshll.u32 (!%p1534_p2), %s1558_s23, 6  ;;  %s166_s6 = scalar_lea.sflag (!%p1534_p2), [#allocation3], %s1558_s23 }
  0x3b   : > { %s169_s7 = scalar_lea.vmem (!%p1534_p2), [#allocation2], %s1141_s27 }
  0x3e   : > { %1388 = dma.done.wait (%p1485_p6), %s166_s6, 1024  }
  0x3f   : > { %1390 = vsyncadd (%p1485_p6), %s166_s6, 4294966272  ;;  %s1142_s0 = sshll.u32 %s1558_s23, 4  ;;  %s176_s4 = scalar_lea.sflag [#allocation6], %s1558_s23 }
  0x40   : > { %s179_s24 = scalar_lea.vmem [#allocation5], %s1142_s0 }
  0x41   : > { %1392 = dma.done.wait (%p1485_p6), %s176_s4, 256  }
  0x42   : > { %1394 = vsyncadd (%p1485_p6), %s176_s4, 4294967040  ;;  %vm2208_vm0 = vcmask 130048   ;;  %v1572_v0 = vld [vmem:[%s179_s24] sm:$0xff]  ;;  %v1574_v1 = vld [vmem:[%s179_s24 + $0x8] sm:$0xff]  ;;  %v1417_v7 = vmov 0.0   ;;  %s1418_s20 = smov 16  }
  0x43   : > { %v206_v2 = vld [vmem:[%s169_s7] sm:$0xff]  ;;  %vm303_vm1 = vcmp.eq.s32.totalorder %v1572_v0, 1  ;;  %vm304_vm2 = vcmp.eq.s32.totalorder %v1574_v1, 1  ;;  %v207_v3 = vld [vmem:[%s169_s7 + $0x8] sm:$0xff]  ;;  %v208_v4 = vld [vmem:[%s169_s7 + $0x10] sm:$0xff]  ;;  %vm305_vm3 = vcmp.eq.s32.totalorder %v1572_v0, 2 }
  0x44   : > { %v209_v5 = vld [vmem:[%s169_s7 + $0x18] sm:$0xff]  ;;  %v217_v6 = vsel %vm2208_vm0, %v206_v2, -inf  ;;  %v1582_v8 = vsel %vm303_vm1, 1.0, %v1417_v7  ;;  %v1587_v9 = vsel %vm304_vm2, 1.0, %v1417_v7  ;;  %v210_v10 = vld [vmem:[%s169_s7 + $0x20] sm:$0xff]  ;;  %v211_v11 = vld [vmem:[%s169_s7 + $0x28] sm:$0xff] }
  0x45   : > { %v212_v12 = vld [vmem:[%s169_s7 + $0x30] sm:$0xff]  ;;  %v218_v13 = vsel %vm2208_vm0, %v208_v4, -inf  ;;  %v339_v14 = vsel %vm2208_vm0, %v1582_v8, 0.0  ;;  %v340_v15 = vsel %vm2208_vm0, %v1587_v9, 0.0  ;;  %v213_v16 = vld [vmem:[%s169_s7 + $0x38] sm:$0xff]  ;;  %v219_v17 = vsel %vm2208_vm0, %v210_v10, -inf }
  0x46   : > { %v221_v18 = vsel %vm2208_vm0, %v212_v12, -inf  ;;  %v341_v19 = vadd.f32 %v340_v15, %v339_v14  ;;  %v220_v20 = vmax.f32 %v217_v6, %v219_v17  ;;  %v224_v22 = vsel %vm2208_vm0, %v207_v3, -inf  ;;  %s1419_s25 = smov 1   ;;  %s1420_s26 = smov 15  }
  0x47   : > { %v222_v21 = vmax.f32 %v218_v13, %v221_v18  ;;  %v225_v23 = vsel %vm2208_vm0, %v209_v5, -inf  ;;  %v226_v24 = vsel %vm2208_vm0, %v211_v11, -inf  ;;  %v228_v25 = vsel %vm2208_vm0, %v213_v16, -inf  ;;  %s1421_s29 = smov 1e-08   ;;  %s1423_s5 = smov 113  }
  0x48   : > { %342 = vadd.xlane.f32.xlu1 %v341_v19  ;;  %v227_v27 = vmax.f32 %v224_v22, %v226_v24  ;;  %v229_v28 = vmax.f32 %v225_v23, %v228_v25  ;;  %vm306_vm4 = vcmp.eq.s32.totalorder %v1574_v1, 2  ;;  %v1605_v43 = vsel %vm305_vm3, 1.0, %v1417_v7  ;;  %s1424_s30 = smov 127  }
  0x49   : > { %v223_v26 = vmax.f32 %v220_v20, %v222_v21  ;;  %v1610_v45 = vsel %vm306_vm4, 1.0, %v1417_v7  ;;  %v404_v46 = vsel %vm2208_vm0, %v1605_v43, 0.0  ;;  %vm307_vm14 = vcmp.eq.s32.totalorder %v1572_v0, 3 }
  0x4a   : > { %v230_v29 = vmax.f32 %v227_v27, %v229_v28  ;;  %v405_v48 = vsel %vm2208_vm0, %v1610_v45, 0.0  ;;  %vm308_vm15 = vcmp.eq.s32.totalorder %v1574_v1, 3 }
  0x4b   : > { %v231_v30 = vsub.f32 %v206_v2, %v223_v26  ;;  %v233_v31 = vsub.f32 %v208_v4, %v223_v26  ;;  %v235_v32 = vsub.f32 %v210_v10, %v223_v26  ;;  %v237_v36 = vsub.f32 %v212_v12, %v223_v26 }
  0x4c   : > { %v232_v33 = vsub.f32 %v207_v3, %v230_v29  ;;  %v234_v34 = vsub.f32 %v209_v5, %v230_v29  ;;  %v236_v35 = vsub.f32 %v211_v11, %v230_v29  ;;  %v238_v39 = vsub.f32 %v213_v16, %v230_v29 }
  0x4d   : > { %v239_v37 = vmul.f32 1.442695, %v231_v30  ;;  %v243_v38 = vmul.f32 1.442695, %v233_v31  ;;  %v247_v42 = vmul.f32 1.442695, %v235_v32  ;;  %v406_v50 = vadd.f32 %v405_v48, %v404_v46 }
  0x4e   : > { %v241_v40 = vmul.f32 1.442695, %v232_v33  ;;  %v245_v41 = vmul.f32 1.442695, %v234_v34  ;;  %v249_v44 = vmul.f32 1.442695, %v236_v35 }
  0x4f   : > { %1253 = vpow2.f32 %v239_v37  ;;  %v251_v47 = vmul.f32 1.442695, %v237_v36  ;;  %v253_v49 = vmul.f32 1.442695, %v238_v39  ;;  %407 = vadd.xlane.f32.xlu2 %v406_v50 }
  0x50   : > { %1255 = vpow2.f32 %v241_v40 }
  0x51   : > { %1257 = vpow2.f32 %v243_v38 }
  0x52   : > { %1259 = vpow2.f32 %v245_v41  ;;  %v514_v41 = vlaneseq }
  0x53   : > { %1261 = vpow2.f32 %v247_v42 }
  0x54   : > { %1263 = vpow2.f32 %v249_v44  ;;  %v1646_v46 = vshrl.u32 %v514_v41, 7 }
  0x55   : > { %v1254_v51 = vpop.eup %1253  ;;  %1265 = vpow2.f32 %v251_v47 }
  0x56   : > { %v1256_v52 = vpop.eup %1255  ;;  %1267 = vpow2.f32 %v253_v49  ;;  %v255_v53 = vsel %vm2208_vm0, %v1254_v51, 0.0  ;;  %vm687_vm13 = vcmp.lt.s32.totalorder %v1646_v46, 1 }
  0x57   : > { %v1258_v54 = vpop.eup %1257  ;;  %v262_v55 = vsel %vm2208_vm0, %v1256_v52, 0.0 }
  0x58   : > { %v1260_v56 = vpop.eup %1259  ;;  %v256_v57 = vsel %vm2208_vm0, %v1258_v54, 0.0 }
  0x59   : > { %v1262_v58 = vpop.eup %1261  ;;  %v257_v59 = vadd.f32 %v256_v57, %v255_v53  ;;  %v263_v60 = vsel %vm2208_vm0, %v1260_v56, 0.0 }
  0x5a   : > { %v1264_v61 = vpop.eup %1263  ;;  %v258_v62 = vsel %vm2208_vm0, %v1262_v58, 0.0  ;;  %v264_v63 = vadd.f32 %v263_v60, %v262_v55 }
  0x5b   : > { %v1266_v2 = vpop.eup %1265  ;;  %v259_v3 = vadd.f32 %v258_v62, %v257_v59  ;;  %v265_v4 = vsel %vm2208_vm0, %v1264_v61, 0.0 }
  0x5c   : > { %v1268_v5 = vpop.eup %1267  ;;  %v260_v6 = vsel %vm2208_vm0, %v1266_v2, 0.0  ;;  %v266_v10 = vadd.f32 %v265_v4, %v264_v63 }
  0x5d   : > { %v261_v11 = vadd.f32 %v260_v6, %v259_v3  ;;  %v267_v12 = vsel %vm2208_vm0, %v1268_v5, 0.0  ;;  %v695_v6 = vrot.slane %v1574_v1, 7 }
  0x5e   : > { %v268_v13 = vadd.f32 %v267_v12, %v266_v10 }
  0x5f   : > { %1269 = vrcp.f32 %v261_v11  ;;  %vm274_vm5 = vweird.f32 %v261_v11  ;;  %v280_v17 = vand.u32 2147483648, %v261_v11  ;;  %v278_v20 = vand.u32 2147483647, %v261_v11 }
  0x60   : > { %1271 = vrcp.f32 %v268_v13  ;;  %v294_v21 = vand.u32 2147483648, %v268_v13  ;;  %vm288_vm7 = vweird.f32 %v268_v13  ;;  %v292_v23 = vand.u32 2147483647, %v268_v13 }
  0x61   : > { %v281_v25 = vor.u32 1.1754944e-38, %v280_v17  ;;  %vm279_vm10 = vcmp.eq.f32.partialorder %v278_v20, 8.507059e+37  ;;  %v1743_v20 = vsel %vm307_vm14, 1.0, %v1417_v7 }
  0x62   : > { %v295_v28 = vor.u32 1.1754944e-38, %v294_v21  ;;  %vm293_vm12 = vcmp.eq.f32.partialorder %v292_v23, 8.507059e+37  ;;  %v1748_v21 = vsel %vm308_vm15, 1.0, %v1417_v7 }
  0x65   : > { %v1270_v14 = vpop.eup %1269 }
  0x66   : > { %v1272_v15 = vpop.eup %1271  ;;  %v270_v16 = vmul.f32 %v1270_v14, %v261_v11  ;;  %vm275_vm6 = vweird.f32 %v1270_v14  ;;  %v1719_v11 = vand.u32 127, %v514_v41 }
  0x67   : > { %v284_v18 = vmul.f32 %v1272_v15, %v268_v13  ;;  %vm289_vm8 = vweird.f32 %v1272_v15  ;;  %vm276_vm9 = vmor %vm274_vm5, %vm275_vm6  ;;  %vm519_vm5 = vcmask 1047680  }
  0x68   : > { %v271_v19 = vsub.f32 1.0, %v270_v16  ;;  %vm290_vm11 = vmor %vm288_vm7, %vm289_vm8 }
  0x69   : > { %v285_v22 = vsub.f32 1.0, %v284_v18 }
  0x6a   : > { %v272_v24 = vmul.f32 %v1270_v14, %v271_v19 }
  0x6b   : > { %v286_v26 = vmul.f32 %v1272_v15, %v285_v22 }
  0x6c   : > { %v273_v27 = vadd.f32 %v1270_v14, %v272_v24 }
  0x6d   : > { %v287_v29 = vadd.f32 %v1272_v15, %v286_v26 }
  0x6e   : > { %v277_v30 = vsel %vm276_vm9, %v1270_v14, %v273_v27 }
  0x6f   : > { %v282_v31 = vsel %vm279_vm10, %v281_v25, %v277_v30  ;;  %v291_v32 = vsel %vm290_vm11, %v1272_v15, %v287_v29 }
  0x70   : > { %v296_v33 = vsel %vm293_vm12, %v295_v28, %v291_v32  ;;  %v1624_v34 = vmul.f32 %v1258_v54, %v282_v31  ;;  %v1626_v35 = vmul.f32 %v1262_v58, %v282_v31 }
  0x71   : > { %v1628_v36 = vmul.f32 %v1260_v56, %v296_v33  ;;  %v1630_v37 = vmul.f32 %v1264_v61, %v296_v33  ;;  %v1655_v48 = vmul.f32 %v1268_v5, %v296_v33 }
  0x72   : > { %v378_v38 = vmul.f32 %v1605_v43, %v1626_v35  ;;  %520 = vrot.lane.b32.xlu0 %v1624_v34, %s1418_s20  ;;  %526 = vrot.lane.b32.xlu2 %v1626_v35, %s1418_s20  ;;  %v1644_v43 = vmul.f32 %v1266_v2, %v282_v31  ;;  %v392_v50 = vsel %vm2208_vm0, %v1626_v35, 0.0  ;;  %v327_v53 = vsel %vm2208_vm0, %v1624_v34, 0.0 }
  0x73   : > { %v379_v39 = vmul.f32 %v1610_v45, %v1630_v37  ;;  %523 = vrot.lane.b32.xlu1 %v1628_v36, %s1418_s20  ;;  %v681_v45 = vrot.slane %v1624_v34, 7  ;;  %v684_v47 = vrot.slane %v1628_v36, 7  ;;  %v393_v51 = vsel %vm2208_vm0, %v1630_v37, 0.0 }
  0x74   : > { %v380_v40 = vsel %vm2208_vm0, %v378_v38, 0.0  ;;  %v394_v52 = vadd.f32 %v393_v51, %v392_v50  ;;  %v328_v54 = vsel %vm2208_vm0, %v1628_v36, 0.0  ;;  %v682_v57 = vrot.slane %v1626_v35, 7 }
  0x75   : > { %v381_v42 = vsel %vm2208_vm0, %v379_v39, 0.0  ;;  %v1659_v49 = vsel %vm687_vm13, %v681_v45, %v684_v47  ;;  %v329_v55 = vadd.f32 %v328_v54, %v327_v53  ;;  %v1675_v56 = vsel %vm687_vm13, %v684_v47, %v681_v45 }
  0x76   : > { %v382_v44 = vadd.f32 %v381_v42, %v380_v40  ;;  %v685_v58 = vrot.slane %v1630_v37, 7  ;;  %v313_v61 = vmul.f32 %v1582_v8, %v1624_v34  ;;  %v314_v62 = vmul.f32 %v1587_v9, %v1628_v36 }
  0x77   : > { %v683_v63 = vrot.slane %v1644_v43, 7  ;;  %v686_v2 = vrot.slane %v1655_v48, 7  ;;  %v694_v9 = vrot.slane %v1572_v0, 7  ;;  %v443_v23 = vmul.f32 %v1743_v20, %v1644_v43 }
  0x78   : > { %v1683_v59 = vsel %vm687_vm13, %v682_v57, %v685_v58  ;;  %v1689_v60 = vsel %vm687_vm13, %v685_v58, %v682_v57  ;;  %v315_v3 = vsel %vm2208_vm0, %v313_v61, 0.0  ;;  %v316_v4 = vsel %vm2208_vm0, %v314_v62, 0.0 }
  0x79   : > { %v317_v5 = vadd.f32 %v316_v4, %v315_v3  ;;  %v1707_v8 = vsel %vm687_vm13, %v686_v2, %v683_v63  ;;  %v1715_v10 = vsel %vm687_vm13, %v694_v9, %v695_v6  ;;  %v1728_v13 = vsel %vm687_vm13, %v695_v6, %v694_v9 }
  0x7a   : > { %529 = vrot.lane.b32.xlu0 %v1630_v37, %s1418_s20  ;;  %v444_v24 = vmul.f32 %v1748_v21, %v1655_v48  ;;  %v445_v26 = vsel %vm2208_vm0, %v443_v23, 0.0  ;;  %v1771_v41 = vsel %vm687_vm13, %v683_v63, %v686_v2  ;;  %v457_v57 = vsel %vm2208_vm0, %v1644_v43, 0.0 }
  0x7b   : > { %532 = vrot.lane.b32.xlu1 %v1644_v43, %s1418_s20  ;;  %v458_v58 = vsel %vm2208_vm0, %v1655_v48, 0.0 }
  0x7c   : > { %v446_v27 = vsel %vm2208_vm0, %v444_v24, 0.0  ;;  %v459_v3 = vadd.f32 %v458_v58, %v457_v57 }
  0x7d   : > { %v447_v28 = vadd.f32 %v446_v27, %v445_v26 }
  0x82   : > { %535 = vrot.lane.b32.xlu0 %v1655_v48, %s1418_s20 }
  0x83   : > { %719 = vrot.lane.b32.xlu1 %v1659_v49, %s1418_s20 }
  0x9b   : > { %395 = vadd.xlane.f32.xlu2 %v394_v52 }
  0xac   : > { %330 = vadd.xlane.f32.xlu0 %v329_v55 }
  0xad   : > { %383 = vadd.xlane.f32.xlu1 %v382_v44 }
  0xb3   : > { %716 = vrot.lane.b32.xlu2 %v1675_v56, %s1418_s20 }
  0xbb   : > { %725 = vrot.lane.b32.xlu2 %v1683_v59, %s1418_s20  ;;  %v343_v14 = vpop.xlane.xlu1 %342 }
  0xbc   : > { %v344_v53 = vrot.slane %v343_v14, 4 }
  0xbe   : > { %v345_v55 = vadd.f32 %v344_v53, %v343_v14 }
  0xc0   : > { %722 = vrot.lane.b32.xlu0 %v1689_v60, %s1418_s20  ;;  %v346_v63 = vrot.slane %v345_v55, 2 }
  0xc2   : > { %v1724_v12 = vpop.xlane.xlu2 %407  ;;  %v347_v6 = vadd.f32 %v346_v63, %v345_v55 }
  0xc3   : > { %556 = vrot.lane.b32.xlu2 %v1572_v0, %s1418_s20 }
  0xc4   : > { %v348_v26 = vrot.slane %v347_v6, 1 }
  0xc6   : > { %559 = vrot.lane.b32.xlu1 %v1574_v1, %s1418_s20 }
  0xcb   : > { %728 = vrot.lane.b32.xlu2 %v1707_v8, %s1418_s20 }
  0xcc   : > { %v1732_v15 = vpop.permute.xlu2 %526 }
  0xce   : > { %731 = vrot.lane.b32.xlu1 %v1771_v41, %s1418_s20 }
  0xd3   : > { %755 = vrot.lane.b32.xlu2 %v1715_v10, %s1418_s20 }
  0xd6   : > { %574 = vrot.lane.b32.xlu1 %v1719_v11, %s1420_s26 }
  0xdb   : > { %764 = vrot.lane.b32.xlu2 %v1719_v11, %s1419_s25 }
  0xe4   : > { %v1760_v30 = vpop.permute.xlu0 %520 }
  0xe5   : > { %v524_v16 = vpop.permute.xlu1 %523 }
  0xe6   : > { %v525_v50 = vsel %vm519_vm5, %v524_v16, %v1628_v36 }
  0xea   : > { %318 = vadd.xlane.f32.xlu0 %v317_v5 }
  0xec   : > { %v1765_v38 = vpop.permute.xlu0 %529 }
  0xed   : > { %v1736_v18 = vpop.permute.xlu1 %532 }
  0xf4   : > { %v1776_v42 = vpop.permute.xlu0 %535 }
  0xf5   : > { %v1750_v22 = vpop.permute.xlu1 %719 }
  0xfe   : > { %568 = vrot.lane.b32.xlu0 %v1719_v11, %s1418_s20 }
 0x106   : > { %752 = vrot.lane.b32.xlu0 %v1728_v13, %s1418_s20 }
 0x10e   : > { %v1734_v17 = vpop.xlane.xlu2 %395 }
 0x10f   : > { %v397_v53 = vrot.slane %v1734_v17, 4 }
 0x116   : > { %v717_v19 = vpop.permute.xlu2 %716 }
 0x117   : > { %v718_v16 = vsel %vm519_vm5, %v717_v19, %v1675_v56 }
 0x11e   : > { %v726_v25 = vpop.permute.xlu2 %725 }
 0x11f   : > { %v331_v47 = vpop.xlane.xlu0 %330 }
 0x120   : > { %v1758_v29 = vpop.xlane.xlu1 %383  ;;  %v332_v51 = vrot.slane %v331_v47, 4 }
 0x122   : > { %v333_v54 = vadd.f32 %v332_v51, %v331_v47  ;;  %v721_v47 = vsel %vm519_vm5, %v1750_v22, %v1659_v49  ;;  %v385_v51 = vrot.slane %v1758_v29, 4  ;;  %v409_v22 = vrot.slane %v1724_v12, 4 }
 0x124   : > { %v334_v61 = vrot.slane %v333_v54, 2  ;;  %v386_v55 = vadd.f32 %v385_v51, %v1758_v29 }
 0x126   : > { %v557_v31 = vpop.permute.xlu2 %556  ;;  %v335_v5 = vadd.f32 %v334_v61, %v333_v54  ;;  %v387_v57 = vrot.slane %v386_v55, 2 }
 0x127   : > { %v558_v40 = vsel %vm519_vm5, %v557_v31, %v1572_v0  ;;  %v349_v31 = vadd.f32 %v348_v26, %v347_v6 }
 0x128   : > { %v336_v23 = vrot.slane %v335_v5, 1 }
 0x12e   : > { %v729_v39 = vpop.permute.xlu2 %728 }
 0x130   : > { %448 = vadd.xlane.f32.xlu0 %v447_v28  ;;  %v337_v28 = vadd.f32 %v336_v23, %v335_v5 }
 0x132   : > { %v1785_v52 = vpop.permute.xlu0 %722 }
 0x136   : > { %v756_v44 = vpop.permute.xlu2 %755 }
 0x137   : > { %v757_v45 = vsel %vm519_vm5, %v756_v44, %v1715_v10 }
 0x138   : > { %v560_v32 = vpop.permute.xlu1 %559 }
 0x139   : > { %v561_v33 = vsel %vm519_vm5, %v560_v32, %v1574_v1  ;;  %v727_v32 = vsel %vm519_vm5, %v726_v25, %v1683_v59  ;;  %v528_v25 = vsel %vm519_vm5, %v1732_v15, %v1626_v35  ;;  %v469_v15 = vsel %vm2208_vm0, %v1743_v20, 0.0 }
 0x13a   : > { %564 = vrot.lane.b32.xlu2 %v561_v33, %s1418_s20  ;;  %v398_v20 = vadd.f32 %v397_v53, %v1734_v17 }
 0x13c   : > { %v399_v58 = vrot.slane %v398_v20, 2 }
 0x144   : > { %562 = vrot.lane.b32.xlu0 %v558_v40, %s1418_s20  ;;  %v730_v40 = vsel %vm519_vm5, %v729_v39, %v1707_v8  ;;  %v534_v39 = vsel %vm519_vm5, %v1736_v18, %v1644_v43 }
 0x14c   : > { %760 = vrot.lane.b32.xlu0 %v757_v45, %s1418_s20 }
 0x154   : > { %540 = vrot.lane.b32.xlu0 %v525_v50, %s1418_s20  ;;  %v470_v50 = vsel %vm2208_vm0, %v1748_v21, 0.0  ;;  %v410_v21 = vadd.f32 %v409_v22, %v1724_v12 }
 0x155   : > { %v471_v18 = vadd.f32 %v470_v50, %v469_v15  ;;  %v1422_v15 = vmov 0  }
 0x15c   : > { %734 = vrot.lane.b32.xlu0 %v718_v16, %s1418_s20 }
 0x15d   : > { %v319_v62 = vpop.xlane.xlu0 %318 }
 0x15e   : > { %v320_v2 = vrot.slane %v319_v62, 4 }
 0x160   : > { %v321_v4 = vadd.f32 %v320_v2, %v319_v62  ;;  %v411_v62 = vrot.slane %v410_v21, 2  ;;  %v388_v2 = vadd.f32 %v387_v57, %v386_v55  ;;  %v724_v55 = vsel %vm519_vm5, %v1785_v52, %v1689_v60 }
 0x162   : > { %v322_v9 = vrot.slane %v321_v4, 2  ;;  %v389_v29 = vrot.slane %v388_v2, 1 }
 0x163   : > { %460 = vadd.xlane.f32.xlu2 %v459_v3 }
 0x164   : > { %v323_v14 = vadd.f32 %v322_v9, %v321_v4  ;;  %740 = vrot.lane.b32.xlu0 %v727_v32, %s1418_s20  ;;  %v400_v4 = vadd.f32 %v399_v58, %v398_v20  ;;  %v412_v9 = vadd.f32 %v411_v62, %v410_v21 }
 0x166   : > { %v324_v24 = vrot.slane %v323_v14, 1  ;;  %v401_v12 = vrot.slane %v400_v4, 1  ;;  %v413_v26 = vrot.slane %v412_v9, 1 }
 0x168   : > { %v325_v27 = vadd.f32 %v324_v24, %v323_v14  ;;  %v1831_v14 = vpop.permute.xlu2 %764  ;;  %v402_v32 = vadd.f32 %v401_v12, %v400_v4 }
 0x16a   : > { %1160 = vpush %v325_v27 }
 0x16b   : > { %1162 = vpush %v337_v28 }
 0x16c   : > { %1164 = vpush %v349_v31  ;;  %742 = vrot.lane.b32.xlu0 %v730_v40, %s1418_s20  ;;  %v390_v31 = vadd.f32 %v389_v29, %v388_v2 }
 0x170   : > { %v569_v33 = vpop.permute.xlu0 %568 }
 0x171   : > { %v570_v19 = vsel %vm519_vm5, %v569_v33, %v1719_v11  ;;  %v414_v33 = vadd.f32 %v413_v26, %v412_v9 }
 0x172   : > { %571 = vrot.lane.b32.xlu1 %v570_v19, %s1418_s20  ;;  %v732_v19 = vpop.permute.xlu1 %731 }
 0x178   : > { %v753_v44 = vpop.permute.xlu0 %752 }
 0x179   : > { %v754_v45 = vsel %vm519_vm5, %v753_v44, %v1728_v13  ;;  %v733_v44 = vsel %vm519_vm5, %v732_v19, %v1771_v41 }
 0x17a   : > { %758 = vrot.lane.b32.xlu1 %v754_v45, %s1418_s20 }
 0x17b   : > { %542 = vrot.lane.b32.xlu2 %v528_v25, %s1418_s20 }
 0x183   : > { %546 = vrot.lane.b32.xlu2 %v534_v39, %s1418_s20  ;;  %v522_v39 = vsel %vm519_vm5, %v1760_v30, %v1624_v34  ;;  %v531_v30 = vsel %vm519_vm5, %v1765_v38, %v1630_v37 }
 0x18b   : > { %736 = vrot.lane.b32.xlu2 %v721_v47, %s1418_s20 }
 0x193   : > { %744 = vrot.lane.b32.xlu2 %v733_v44, %s1418_s20 }
 0x194   : > { %v565_v40 = vpop.permute.xlu2 %564 }
 0x195   : > { %v567_v45 = vsel %vm519_vm5, %v565_v40, %v1574_v1 }
 0x196   : > { %vm620_vm10 = vcmp.eq.s32.totalorder %v567_v45, 1  ;;  %vm656_vm12 = vcmp.eq.s32.totalorder %v567_v45, 3 }
 0x197   : > { %v658_v22 = vsel %vm656_vm12, 1, %v1422_v15 }
 0x19b   : > { %s1818_s8 = spop %1160 }
 0x19c   : > { %s1163_s14 = spop %1162  ;;  %s351_s28 = smul.f32 2.0, %s1818_s8 }
 0x19d   : > { %s1165_s16 = spop %1164 }
 0x19e   : > { %s353_s17 = sadd.f32 %s1165_s16, %s1163_s14 }
 0x19f   : > { %s1881_s27 = sadd.f32 1e-05, %s351_s28 }
 0x1a0   : > { %s354_s19 = sadd.f32 1e-05, %s353_s17 }
 0x1a2   : > { %s355_s3 = smax.f32 %s1421_s29, %s354_s19 }
 0x1a3   : > { %v356_v54 = vstv %s355_s3  ;;  %v1833_v23 = vpop.xlane.xlu0 %448 }
 0x1a4   : > { %472 = vadd.xlane.f32.xlu1 %v471_v18  ;;  %1273 = vrcp.f32 %v356_v54  ;;  %v368_v5 = vand.u32 2147483648, %v356_v54  ;;  %v366_v16 = vand.u32 2147483647, %v356_v54  ;;  %vm362_vm7 = vweird.f32 %v356_v54 }
 0x1a5   : > { %v622_v18 = vsel %vm620_vm10, 1, %v1422_v15  ;;  %v450_v2 = vrot.slane %v1833_v23, 4 }
 0x1a6   : > { %v369_v24 = vor.u32 1.1754944e-38, %v368_v5  ;;  %vm367_vm9 = vcmp.eq.f32.partialorder %v366_v16, 8.507059e+37  ;;  %625 = vrot.lane.b32.xlu2 %v622_v18, %s1423_s5 }
 0x1aa   : > { %v1274_v61 = vpop.eup %1273 }
 0x1ab   : > { %v358_v63 = vmul.f32 %v1274_v61, %v356_v54  ;;  %vm363_vm6 = vweird.f32 %v1274_v61  ;;  %v537_v54 = vsel %vm519_vm5, %v1776_v42, %v1655_v48  ;;  %v575_v42 = vpop.permute.xlu1 %574 }
 0x1ac   : > { %vm364_vm8 = vmor %vm362_vm7, %vm363_vm6 }
 0x1ad   : > { %v359_v3 = vsub.f32 1.0, %v358_v63 }
 0x1ae   : > { %661 = vrot.lane.b32.xlu2 %v658_v22, %s1423_s5 }
 0x1af   : > { %v360_v6 = vmul.f32 %v1274_v61, %v359_v3 }
 0x1b1   : > { %v361_v17 = vadd.f32 %v1274_v61, %v360_v6  ;;  %v451_v6 = vadd.f32 %v450_v2, %v1833_v23 }
 0x1b3   : > { %v365_v27 = vsel %vm364_vm8, %v1274_v61, %v361_v17  ;;  %vm638_vm8 = vcmp.eq.s32.totalorder %v567_v45, 2  ;;  %v452_v17 = vrot.slane %v451_v6, 2 }
 0x1b4   : > { %v370_v28 = vsel %vm367_vm9, %v369_v24, %v365_v27  ;;  %v640_v21 = vsel %vm638_vm8, 1, %v1422_v15 }
 0x1b5   : > { %1166 = vpush %v370_v28  ;;  %v453_v27 = vadd.f32 %v452_v17, %v451_v6 }
 0x1b6   : > { %1168 = vpush %v390_v31  ;;  %v563_v25 = vpop.permute.xlu0 %562 }
 0x1b7   : > { %1170 = vpush %v402_v32  ;;  %v566_v47 = vsel %vm519_vm5, %v563_v25, %v1572_v0  ;;  %v454_v44 = vrot.slane %v453_v27, 1  ;;  %v1426_v0 = vmov 11160.0  }
 0x1b8   : > { %1172 = vpush %v414_v33  ;;  %vm637_vm11 = vcmp.eq.s32.totalorder %v566_v47, 2  ;;  %vm619_vm7 = vcmp.eq.s32.totalorder %v566_v47, 1  ;;  %vm655_vm9 = vcmp.eq.s32.totalorder %v566_v47, 3 }
 0x1b9   : > { %v639_v50 = vsel %vm637_vm11, 1, %v1422_v15  ;;  %v621_v20 = vsel %vm619_vm7, 1, %v1422_v15  ;;  %v657_v63 = vsel %vm655_vm9, 1, %v1422_v15 }
 0x1ba   : > { %641 = vrot.lane.b32.xlu0 %v639_v50, %s1423_s5 }
 0x1bd   : > { %538 = vrot.lane.b32.xlu1 %v522_v39, %s1418_s20 }
 0x1be   : > { %v761_v51 = vpop.permute.xlu0 %760 }
 0x1bf   : > { %v1856_v53 = vsel %vm519_vm5, %v761_v51, %v1715_v10 }
 0x1c0   : > { %vm810_vm6 = vcmp.eq.s32.totalorder %v1856_v53, 1  ;;  %vm846_vm8 = vcmp.eq.s32.totalorder %v1856_v53, 3  ;;  %vm828_vm9 = vcmp.eq.s32.totalorder %v1856_v53, 2 }
 0x1c1   : > { %v1866_v38 = vsel %vm810_vm6, 1, %v1422_v15  ;;  %v1914_v32 = vsel %vm846_vm8, 1, %v1422_v15  ;;  %v830_v33 = vsel %vm828_vm9, 1, %v1422_v15 }
 0x1c2   : > { %815 = vrot.lane.b32.xlu0 %v1866_v38, %s1424_s30 }
 0x1c5   : > { %544 = vrot.lane.b32.xlu1 %v531_v30, %s1418_s20  ;;  %v455_v30 = vadd.f32 %v454_v44, %v453_v27 }
 0x1c6   : > { %v541_v22 = vpop.permute.xlu0 %540 }
 0x1cd   : > { %548 = vrot.lane.b32.xlu1 %v537_v54, %s1418_s20  ;;  %v551_v54 = vsel %vm519_vm5, %v541_v22, %v1628_v36 }
 0x1d5   : > { %738 = vrot.lane.b32.xlu1 %v724_v55, %s1418_s20  ;;  %v735_v55 = vpop.permute.xlu0 %734 }
 0x1d6   : > { %v461_v16 = vpop.xlane.xlu2 %460 }
 0x1dd   : > { %623 = vrot.lane.b32.xlu1 %v621_v20, %s1423_s5 }
 0x1e4   : > { %v572_v57 = vpop.permute.xlu1 %571 }
 0x1e5   : > { %v573_v58 = vsel %vm519_vm5, %v572_v57, %v1719_v11  ;;  %643 = vrot.lane.b32.xlu1 %v640_v21, %s1423_s5  ;;  %v746_v21 = vsel %vm519_vm5, %v735_v55, %v1675_v56 }
 0x1e6   : > { %v1883_v52 = vsub.s32 %v573_v58, %v575_v42  ;;  %v766_v61 = vsub.s32 %v573_v58, %v1831_v14  ;;  %s1886_s6 = spop %1166  ;;  %v462_v14 = vrot.slane %v461_v16, 4  ;;  %v543_v42 = vpop.permute.xlu2 %542  ;;  %v741_v58 = vpop.permute.xlu0 %740 }
 0x1e7   : > { %s372_s7 = smul.f32 %s1886_s6, %s1881_s27  ;;  %s1890_s0 = spop %1168  ;;  %v552_v20 = vsel %vm519_vm5, %v543_v42, %v1626_v35 }
 0x1e8   : > { %v768_v62 = vsub.s32 0, %v766_v61  ;;  %vm767_vm10 = vcmp.lt.s32.totalorder %v766_v61, 0  ;;  %s1171_s4 = spop %1170  ;;  %v463_v26 = vadd.f32 %v462_v14, %v461_v16  ;;  %s416_s8 = smul.f32 2.0, %s1890_s0 }
 0x1e9   : > { %s1173_s24 = spop %1172 }
 0x1ea   : > { %v769_v11 = vsel %vm767_vm10, %v768_v62, %v766_v61  ;;  %s418_s20 = sadd.f32 %s1173_s24, %s1171_s4  ;;  %v464_v28 = vrot.slane %v463_v26, 2 }
 0x1eb   : > { %vm770_vm11 = vcmp.eq.s32.totalorder %v769_v11, 1  ;;  %v749_v11 = vsel %vm519_vm5, %v741_v58, %v1683_v59  ;;  %s417_s14 = sadd.f32 1e-05, %s416_s8 }
 0x1ec   : > { %v759_v3 = vpop.permute.xlu1 %758  ;;  %v1153_v4 = vsel %vm770_vm11, 1.0, %v1417_v7  ;;  %s419_s25 = sadd.f32 1e-05, %s418_s20  ;;  %v465_v39 = vadd.f32 %v464_v28, %v463_v26  ;;  %s1143_s20 = sshll.u32 %s1558_s23, 3 }
 0x1ed   : > { %v762_v5 = vsel %vm519_vm5, %v759_v3, %v1728_v13  ;;  %864 = vrot.lane.b32.xlu2 %v1153_v4, %s1424_s30  ;;  %659 = vrot.lane.b32.xlu1 %v657_v63, %s1423_s5 }
 0x1ee   : > { %vm845_vm12 = vcmp.eq.s32.totalorder %v762_v5, 3  ;;  %s420_s26 = smax.f32 %s1421_s29, %s419_s25  ;;  %vm809_vm6 = vcmp.eq.s32.totalorder %v762_v5, 1  ;;  %vm827_vm7 = vcmp.eq.s32.totalorder %v762_v5, 2  ;;  %v466_v50 = vrot.slane %v465_v39, 1  ;;  %v743_v3 = vpop.permute.xlu0 %742  ;;  %v547_v14 = vpop.permute.xlu2 %546  ;;  %s1155_s25 = sshll.u32 %s1463_s13, 3 }
 0x1ef   : > { %v1900_v9 = vsel %vm845_vm12, 1, %v1422_v15  ;;  %v421_v29 = vstv %s420_s26  ;;  %v811_v12 = vsel %vm809_vm6, 1, %v1422_v15  ;;  %v829_v24 = vsel %vm827_vm7, 1, %v1422_v15  ;;  %s1023_s13 = scalar_lea.sflag [#allocation4], %s1558_s23 }
 0x1f0   : > { %849 = vrot.lane.b32.xlu0 %v1900_v9, %s1424_s30  ;;  %1275 = vrcp.f32 %v421_v29  ;;  %v433_v40 = vand.u32 2147483648, %v421_v29  ;;  %v431_v25 = vand.u32 2147483647, %v421_v29  ;;  %vm427_vm11 = vweird.f32 %v421_v29 }
 0x1f1   : > { %v467_v15 = vadd.f32 %v466_v50, %v465_v39  ;;  %v750_v5 = vsel %vm519_vm5, %v743_v3, %v1707_v8  ;;  %vm577_vm7 = vcmp.lt.s32.totalorder %v1883_v52, 0 }
 0x1f2   : > { %v434_v18 = vor.u32 1.1754944e-38, %v433_v40  ;;  %vm432_vm6 = vcmp.eq.f32.partialorder %v431_v25, 8.507059e+37 }
 0x1f5   : > { %813 = vrot.lane.b32.xlu2 %v811_v12, %s1424_s30  ;;  %831 = vrot.lane.b32.xlu1 %v829_v24, %s1424_s30 }
 0x1f6   : > { %v1276_v23 = vpop.eup %1275 }
 0x1f7   : > { %v423_v31 = vmul.f32 %v1276_v23, %v421_v29  ;;  %vm428_vm10 = vweird.f32 %v1276_v23 }
 0x1f8   : > { %963 = vrot.lane.b32.xlu0 %v829_v24, %s1423_s5  ;;  %vm429_vm12 = vmor %vm427_vm11, %vm428_vm10 }
 0x1f9   : > { %v424_v19 = vsub.f32 1.0, %v423_v31 }
 0x1fb   : > { %v425_v45 = vmul.f32 %v1276_v23, %v424_v19  ;;  %v578_v19 = vsub.s32 0, %v1883_v52 }
 0x1fd   : > { %851 = vrot.lane.b32.xlu1 %v1914_v32, %s1424_s30  ;;  %833 = vrot.lane.b32.xlu2 %v830_v33, %s1424_s30  ;;  %v426_v47 = vadd.f32 %v1276_v23, %v425_v45  ;;  %v1425_v45 = vmov 6.0   ;;  %v579_v25 = vsel %vm577_vm7, %v578_v19, %v1883_v52 }
 0x1fe   : > { %1277 = vrcp.f32 %v1425_v45 }
 0x1ff   : > { %v430_v51 = vsel %vm429_vm12, %v1276_v23, %v426_v47  ;;  %v554_v23 = vsel %vm519_vm5, %v547_v14, %v1644_v43 }
 0x200   : > { %v435_v53 = vsel %vm432_vm6, %v434_v18, %v430_v51 }
 0x201   : > { %1174 = vpush %v435_v53 }
 0x202   : > { %1176 = vpush %v455_v30 }
 0x203   : > { %1178 = vpush %v467_v15 }
 0x204   : > { %v1278_v47 = vpop.eup %1277 }
 0x205   : > { %949 = vrot.lane.b32.xlu1 %v811_v12, %s1423_s5  ;;  %951 = vrot.lane.b32.xlu2 %v1866_v38, %s1423_s5  ;;  %v737_v12 = vpop.permute.xlu2 %736  ;;  %v506_v30 = vmul.f32 6.0, %v1278_v47  ;;  %vm510_vm9 = vweird.f32 %v1278_v47 }
 0x207   : > { %v507_v15 = vsub.f32 1.0, %v506_v30 }
 0x209   : > { %v508_v22 = vmul.f32 %v1278_v47, %v507_v15 }
 0x20d   : > { %965 = vrot.lane.b32.xlu1 %v830_v33, %s1423_s5  ;;  %591 = vrot.lane.b32.xlu2 %v551_v54, %s1423_s5  ;;  %v745_v27 = vpop.permute.xlu2 %744  ;;  %v747_v33 = vsel %vm519_vm5, %v737_v12, %v1659_v49 }
 0x20e   : > { %v751_v44 = vsel %vm519_vm5, %v745_v27, %v1771_v41 }
 0x215   : > { %593 = vrot.lane.b32.xlu1 %v552_v20, %s1423_s5  ;;  %779 = vrot.lane.b32.xlu2 %v746_v21, %s1424_s30  ;;  %v1965_v40 = vpop.permute.xlu2 %625 }
 0x217   : > { %v473_v38 = vpop.xlane.xlu1 %472 }
 0x218   : > { %v474_v57 = vrot.slane %v473_v38, 4 }
 0x21a   : > { %v475_v61 = vadd.f32 %v474_v57, %v473_v38  ;;  %v509_v38 = vadd.f32 %v1278_v47, %v508_v22 }
 0x21c   : > { %v476_v62 = vrot.slane %v475_v61, 2 }
 0x21d   : > { %785 = vrot.lane.b32.xlu2 %v749_v11, %s1424_s30  ;;  %v1982_v18 = vpop.permute.xlu2 %661 }
 0x21e   : > { %v477_v63 = vadd.f32 %v476_v62, %v475_v61 }
 0x220   : > { %v478_v2 = vrot.slane %v477_v63, 1 }
 0x222   : > { %v479_v4 = vadd.f32 %v478_v2, %v477_v63 }
 0x224   : > { %1180 = vpush %v479_v4 }
 0x225   : > { %787 = vrot.lane.b32.xlu2 %v750_v5, %s1424_s30 }
 0x22f   : > { %v539_v6 = vpop.permute.xlu1 %538 }
 0x230   : > { %v550_v16 = vsel %vm519_vm5, %v539_v6, %v1624_v34 }
 0x231   : > { %589 = vrot.lane.b32.xlu0 %v550_v16, %s1423_s5 }
 0x232   : > { %s1175_s16 = spop %1174 }
 0x233   : > { %s437_s17 = smul.f32 %s1175_s16, %s417_s14  ;;  %s1972_s3 = spop %1176 }
 0x234   : > { %s1179_s28 = spop %1178 }
 0x235   : > { %s1946_s19 = sadd.f32 %s437_s17, %s372_s7 }
 0x237   : > { %v545_v29 = vpop.permute.xlu1 %544 }
 0x238   : > { %v553_v17 = vsel %vm519_vm5, %v545_v29, %v1630_v37 }
 0x239   : > { %595 = vrot.lane.b32.xlu0 %v553_v17, %s1423_s5 }
 0x23f   : > { %v549_v24 = vpop.permute.xlu1 %548 }
 0x240   : > { %v555_v26 = vsel %vm519_vm5, %v549_v24, %v1655_v48 }
 0x241   : > { %599 = vrot.lane.b32.xlu1 %v555_v26, %s1423_s5  ;;  %597 = vrot.lane.b32.xlu0 %v554_v23, %s1423_s5 }
 0x247   : > { %v739_v28 = vpop.permute.xlu1 %738  ;;  %v1989_v54 = vpop.permute.xlu2 %864 }
 0x248   : > { %v748_v31 = vsel %vm519_vm5, %v739_v28, %v1689_v60  ;;  %vm580_vm5 = vcmp.eq.s32.totalorder %v579_v25, 1 }
 0x249   : > { %783 = vrot.lane.b32.xlu1 %v748_v31, %s1424_s30  ;;  %781 = vrot.lane.b32.xlu0 %v747_v33, %s1424_s30  ;;  %v1150_v50 = vsel %vm580_vm5, 1.0, %v1417_v7 }
 0x24a   : > { %923 = vrot.lane.b32.xlu2 %v748_v31, %s1423_s5 }
 0x24f   : > { %v1976_v39 = vpop.permute.xlu1 %623  ;;  %v1994_v2 = vpop.permute.xlu2 %813 }
 0x250   : > { %vm627_vm7 = vcmp.ne.s32.totalorder %v1976_v39, 0 }
 0x251   : > { %921 = vrot.lane.b32.xlu1 %v747_v33, %s1423_s5  ;;  %789 = vrot.lane.b32.xlu0 %v751_v44, %s1424_s30 }
 0x252   : > { %927 = vrot.lane.b32.xlu2 %v750_v5, %s1423_s5  ;;  %v642_v5 = vpop.permute.xlu0 %641 }
 0x253   : > { %vm645_vm6 = vcmp.ne.s32.totalorder %v642_v5, 0 }
 0x254   : > { %vm647_vm5 = vmxor %vm305_vm3, %vm645_vm6  ;;  %vm664_vm6 = vcmp.ne.s32.totalorder %v1982_v18, 0 }
 0x255   : > { %s1181_s27 = spop %1180 }
 0x256   : > { %s483_s6 = sadd.f32 %s1181_s27, %s1179_s28 }
 0x257   : > { %v1986_v51 = vpop.permute.xlu1 %643  ;;  %v2000_v4 = vpop.permute.xlu2 %833 }
 0x258   : > { %s484_s7 = sadd.f32 1e-05, %s483_s6  ;;  %s205_s6 = scalar_lea.vmem [#allocation7], %s1143_s20 }
 0x259   : > { %979 = vrot.lane.b32.xlu1 %v1914_v32, %s1423_s5  ;;  %919 = vrot.lane.b32.xlu0 %v746_v21, %s1423_s5  ;;  %s1363_s20 = scalar_lea.hbm %s2207_s2, 16 }
 0x25a   : > { %s485_s30 = smax.f32 %s1421_s29, %s484_s7  ;;  %674 = vrot.lane.b32.xlu2 %v1150_v50, %s1423_s5  ;;  %v2006_v14 = vpop.permute.xlu0 %815  ;;  %s481_s29 = smul.f32 2.0, %s1972_s3 }
 0x25b   : > { %v486_v52 = vstv %s485_s30  ;;  %s1035_s7 = sshll.u32 %s205_s6, 4  ;;  %s1036_s7 = int_to_ptr.vmem [resolvable:$true] %s1035_s7 }
 0x25c   : > { %1279 = vrcp.f32 %v486_v52  ;;  %v498_v42 = vand.u32 2147483648, %v486_v52  ;;  %v496_v21 = vand.u32 2147483647, %v486_v52  ;;  %vm492_vm10 = vweird.f32 %v486_v52 }
 0x25d   : > { %1281 = vrcp.f32 %v1426_v0 }
 0x25e   : > { %v499_v61 = vor.u32 1.1754944e-38, %v498_v42  ;;  %vm497_vm12 = vcmp.eq.f32.partialorder %v496_v21, 8.507059e+37 }
 0x25f   : > { %v1991_v57 = vpop.permute.xlu1 %659  ;;  %v2004_v16 = vpop.permute.xlu2 %951 }
 0x261   : > { %925 = vrot.lane.b32.xlu0 %v749_v11, %s1423_s5  ;;  %v511_v11 = vsel %vm510_vm9, %v1278_v47, %v509_v38  ;;  %vm628_vm9 = vcmp.ne.s32.totalorder %v1965_v40, 0 }
 0x262   : > { %v1280_v53 = vpop.eup %1279  ;;  %v2010_v12 = vpop.permute.xlu0 %849 }
 0x263   : > { %v488_v32 = vmul.f32 %v1280_v53, %v486_v52  ;;  %vm493_vm8 = vweird.f32 %v1280_v53  ;;  %v698_v52 = vrot.slane %v1646_v46, 7 }
 0x264   : > { %vm494_vm11 = vmor %vm492_vm10, %vm493_vm8  ;;  %vm646_vm10 = vcmp.ne.s32.totalorder %v1986_v51, 0 }
 0x265   : > { %v489_v55 = vsub.f32 1.0, %v488_v32  ;;  %vm629_vm8 = vmxor %vm303_vm1, %vm627_vm7  ;;  %vm663_vm7 = vcmp.ne.s32.totalorder %v1991_v57, 0 }
 0x267   : > { %v490_v20 = vmul.f32 %v1280_v53, %v489_v55  ;;  %v1998_v3 = vpop.permute.xlu1 %831  ;;  %v592_v17 = vpop.permute.xlu2 %591 }
 0x268   : > { %v608_v45 = vsub.f32 %v1628_v36, %v592_v17 }
 0x269   : > { %929 = vrot.lane.b32.xlu0 %v751_v44, %s1423_s5  ;;  %v491_v58 = vadd.f32 %v1280_v53, %v490_v20  ;;  %v516_v44 = vadd.s32 8, %v1646_v46 }
 0x26a   : > { %v2017_v26 = vpop.permute.xlu0 %963  ;;  %v614_v15 = vand.u32 2147483647, %v608_v45 }
 0x26b   : > { %v495_v62 = vsel %vm494_vm11, %v1280_v53, %v491_v58  ;;  %v699_v30 = vrot.slane %v516_v44, 7  ;;  %vm630_vm11 = vmxor %vm304_vm2, %vm628_vm9 }
 0x26c   : > { %v500_v63 = vsel %vm497_vm12, %v499_v61, %v495_v62  ;;  %v632_v21 = vsub.f32 1.0, %v614_v15  ;;  %vm648_vm12 = vmxor %vm306_vm4, %vm646_vm10 }
 0x26d   : > { %1182 = vpush %v500_v63  ;;  %v701_v20 = vsel %vm687_vm13, %v699_v30, %v698_v52 }
 0x26e   : > { %1184 = vpush %v511_v11  ;;  %v702_v61 = vsub.s32 %v701_v20, %v1646_v46  ;;  %v634_v62 = vsel %vm630_vm11, %v632_v21, %v614_v15  ;;  %vm817_vm11 = vcmp.ne.s32.totalorder %v1994_v2, 0 }
 0x26f   : > { %v2002_v6 = vpop.permute.xlu1 %851 }
 0x271   : > { %977 = vrot.lane.b32.xlu0 %v1900_v9, %s1423_s5  ;;  %v2014_v9 = vpop.permute.xlu2 %779  ;;  %s482_s5 = sadd.f32 1e-05, %s481_s29 }
 0x277   : > { %v2008_v29 = vpop.permute.xlu1 %949 }
 0x279   : > { %v2020_v28 = vpop.permute.xlu2 %785 }
 0x27f   : > { %v2012_v24 = vpop.permute.xlu1 %965 }
 0x280   : > { %vm968_vm0 = vcmp.ne.s32.totalorder %v2012_v24, 0 }
 0x281   : > { %v788_v53 = vpop.permute.xlu2 %787 }
 0x287   : > { %v594_v23 = vpop.permute.xlu1 %593 }
 0x288   : > { %v609_v27 = vsub.f32 %v1626_v35, %v594_v23 }
 0x28a   : > { %v615_v31 = vand.u32 2147483647, %v609_v27  ;;  %v700_v27 = vsel %vm687_vm13, %v698_v52, %v699_v30  ;;  %vm665_vm13 = vmxor %vm307_vm14, %vm663_vm7  ;;  %vm853_vm7 = vcmp.ne.s32.totalorder %v2010_v12, 0 }
 0x28b   : > { %v703_v18 = vsub.s32 %v700_v27, %v516_v44 }
 0x28c   : > { %v649_v25 = vsub.f32 1.0, %v615_v31 }
 0x28d   : > { %vm707_vm9 = vcmp.lt.s32.totalorder %v703_v18, 0  ;;  %v708_v21 = vsub.s32 0, %v703_v18 }
 0x28e   : > { %v651_v32 = vsel %vm647_vm5, %v649_v25, %v615_v31  ;;  %v705_v31 = vsub.s32 0, %v702_v61  ;;  %vm704_vm5 = vcmp.lt.s32.totalorder %v702_v61, 0  ;;  %v801_v25 = vsub.f32 %v1644_v43, %v788_v53 }
 0x290   : > { %v706_v46 = vsel %vm704_vm5, %v705_v31, %v702_v61 }
 0x291   : > { %vm710_vm10 = vcmp.eq.s32.totalorder %v706_v46, 1 }
 0x29e   : > { %s1183_s0 = spop %1182 }
 0x29f   : > { %s502_s4 = smul.f32 %s1183_s0, %s482_s5  ;;  %s1185_s8 = spop %1184 }
 0x2a1   : > { %s2023_s24 = sadd.f32 %s502_s4, %s1946_s19  ;;  %s1033_s19 = scalar_lea.hbm %s2207_s2, %s1155_s25 }
 0x2a2   : > { %s1037_s29 = sshll.u32 %s1033_s19, 4  ;;  %s1038_s29 = int_to_ptr.hbm [resolvable:$true] %s1037_s29 }
 0x2a3   : > { %v590_v33 = vpop.permute.xlu0 %589  ;;  %s504_s26 = ssub.f32 0.0, %s2023_s24  ;;  %s1357_s0 = sshra.s32 %s1038_s29, 4  ;;  %s1358_s0 = int_to_ptr.hbm [resolvable:$true] %s1357_s0 }
 0x2a4   : > { %v607_v19 = vsub.f32 %v1624_v34, %v590_v33  ;;  %v2044_v11 = vpop.permute.xlu2 %923  ;;  %v797_v33 = vsub.f32 %v1624_v34, %v2014_v9  ;;  %s1359_s4 = scalar_lea.hbm %s1358_s0, 8  ;;  %p1364_p10 = scmp.lt.s32.totalorder %s1358_s0, %s2207_s2 }
 0x2a5   : > { %s513_s27 = smul.f32 %s1185_s8, %s504_s26  ;;  %p1360_p6 = scmp.ne.s32.totalorder %s1358_s0, %s1359_s4 }
 0x2a6   : > { %v613_v47 = vand.u32 2147483647, %v607_v19  ;;  %v803_v52 = vand.u32 2147483647, %v797_v33  ;;  %p1365_p2 = scmp.lt.s32.totalorder %s1363_s20, %s1359_s4 }
 0x2a7   : > { %p1361_p13 = pnand %p1360_p6, %p1492_p11 }
 0x2a8   : > { %v631_v50 = vsub.f32 1.0, %v613_v47  ;;  %p1366_p9 = por %p1365_p2, %p1364_p10 }
 0x2a9   : > { %p1362_p3 = pneg %p1361_p13 }
 0x2aa   : > { %v633_v22 = vsel %vm629_vm8, %v631_v50, %v613_v47  ;;  %vm666_vm8 = vmxor %vm308_vm15, %vm664_vm6 }
 0x2ab   : > { %v653_v55 = vadd.f32 %v651_v32, %v633_v22  ;;  %v596_v39 = vpop.permute.xlu0 %595  ;;  %vm819_vm6 = vmxor %vm303_vm1, %vm817_vm11  ;;  %vm836_vm11 = vcmp.ne.s32.totalorder %v2000_v4, 0  ;;  %p1367_p0 = pnand %p1366_p9, %p1362_p3 }
 0x2ac   : > { %v610_v42 = vsub.f32 %v1630_v37, %v596_v39  ;;  %v800_v39 = vsub.f32 %v1630_v37, %v2020_v28  ;;  %v2061_v20 = vpop.permute.xlu2 %927 }
 0x2ae   : > { %v616_v38 = vand.u32 2147483647, %v610_v42  ;;  %v807_v42 = vand.u32 2147483647, %v801_v25  ;;  %v806_v28 = vand.u32 2147483647, %v800_v39 }
 0x2b0   : > { %v650_v58 = vsub.f32 1.0, %v616_v38  ;;  %v857_v61 = vsub.f32 1.0, %v807_v42 }
 0x2b2   : > { %v652_v40 = vsel %vm648_vm12, %v650_v58, %v616_v38  ;;  %vm835_vm12 = vcmp.ne.s32.totalorder %v1998_v3, 0 }
 0x2b3   : > { %v654_v63 = vadd.f32 %v652_v40, %v634_v62  ;;  %v600_v5 = vpop.permute.xlu1 %599  ;;  %v598_v17 = vpop.permute.xlu0 %597  ;;  %v709_v40 = vsel %vm707_vm9, %v708_v21, %v703_v18  ;;  %vm837_vm5 = vmxor %vm305_vm3, %vm835_vm12  ;;  %vm854_vm12 = vcmp.ne.s32.totalorder %v2002_v6, 0 }
 0x2b4   : > { %v612_v51 = vsub.f32 %v1655_v48, %v600_v5  ;;  %v611_v23 = vsub.f32 %v1644_v43, %v598_v17  ;;  %vm711_vm9 = vcmp.eq.s32.totalorder %v709_v40, 1  ;;  %v2085_v33 = vpop.permute.xlu2 %674 }
 0x2b6   : > { %v618_v19 = vand.u32 2147483647, %v612_v51  ;;  %v617_v45 = vand.u32 2147483647, %v611_v23  ;;  %v840_v51 = vsub.f32 1.0, %v806_v28 }
 0x2b8   : > { %v668_v47 = vsub.f32 1.0, %v618_v19  ;;  %v667_v50 = vsub.f32 1.0, %v617_v45 }
 0x2ba   : > { %v670_v57 = vsel %vm666_vm8, %v668_v47, %v618_v19  ;;  %v669_v30 = vsel %vm665_vm13, %v667_v50, %v617_v45  ;;  %vm818_vm8 = vcmp.ne.s32.totalorder %v2006_v14, 0  ;;  %vm855_vm13 = vmxor %vm307_vm14, %vm853_vm7  ;;  %v2091_v47 = vsel %vm711_vm9, 1.0, %v1417_v7 }
 0x2bb   : > { %v672_v15 = vadd.f32 %v670_v57, %v654_v63  ;;  %v671_v9 = vadd.f32 %v669_v30, %v653_v55  ;;  %v784_v32 = vpop.permute.xlu1 %783  ;;  %v782_v22 = vpop.permute.xlu0 %781  ;;  %v821_v55 = vsub.f32 1.0, %v803_v52  ;;  %v2071_v63 = vsel %vm710_vm10, 1.0, %v1417_v7  ;;  %vm820_vm10 = vmxor %vm304_vm2, %vm818_vm8 }
 0x2bc   : > { %v799_v53 = vsub.f32 %v1626_v35, %v784_v32  ;;  %v798_v44 = vsub.f32 %v1628_v36, %v782_v22  ;;  %v859_v23 = vsel %vm855_vm13, %v857_v61, %v807_v42  ;;  %v867_v31 = vmul.f32 %v2071_v63, %v1989_v54  ;;  %vm856_vm7 = vmxor %vm308_vm15, %vm854_vm12 }
 0x2bd   : > { %v823_v2 = vsel %vm819_vm6, %v821_v55, %v803_v52  ;;  %vm838_vm6 = vmxor %vm306_vm4, %vm836_vm11  ;;  %v677_v4 = vmul.f32 %v2085_v33, %v671_v9  ;;  %v874_v57 = vsub.f32 %v1628_v36, %v1659_v49  ;;  %v868_v30 = vmul.f32 %v2091_v47, %v1989_v54 }
 0x2be   : > { %v805_v38 = vand.u32 2147483647, %v799_v53  ;;  %v804_v58 = vand.u32 2147483647, %v798_v44  ;;  %v842_v50 = vsel %vm838_vm6, %v840_v51, %v806_v28  ;;  %v876_v7 = vsub.f32 %v1630_v37, %v1683_v59 }
 0x2bf   : > { %v873_v22 = vsub.f32 %v1624_v34, %v1675_v56  ;;  %v678_v39 = vmul.f32 %v2085_v33, %v672_v15  ;;  %v875_v53 = vsub.f32 %v1626_v35, %v1689_v60  ;;  %v880_v44 = vand.u32 2147483647, %v874_v57 }
 0x2c0   : > { %v839_v62 = vsub.f32 1.0, %v805_v38  ;;  %v822_v5 = vsub.f32 1.0, %v804_v58  ;;  %v878_v49 = vsub.f32 %v1655_v48, %v1771_v41  ;;  %v882_v54 = vand.u32 2147483647, %v876_v7 }
 0x2c1   : > { %v879_v55 = vand.u32 2147483647, %v873_v22  ;;  %v877_v59 = vsub.f32 %v1644_v43, %v1707_v8  ;;  %vm896_vm8 = vcmp.eq.s32.totalorder %v1715_v10, 2  ;;  %v890_v15 = vsub.f32 1.0, %v880_v44 }
 0x2c2   : > { %v841_v3 = vsel %vm837_vm5, %v839_v62, %v805_v38  ;;  %v824_v19 = vsel %vm820_vm10, %v822_v5, %v804_v58  ;;  %vm886_vm5 = vcmp.eq.s32.totalorder %v1715_v10, 1  ;;  %v881_v38 = vand.u32 2147483647, %v875_v53  ;;  %vm898_vm10 = vmxor %vm306_vm4, %vm896_vm8 }
 0x2c3   : > { %v843_v17 = vadd.f32 %v841_v3, %v823_v2  ;;  %v790_v12 = vpop.permute.xlu0 %789  ;;  %v844_v46 = vadd.f32 %v842_v50, %v824_v19  ;;  %v922_v56 = vpop.permute.xlu1 %921  ;;  %v884_v58 = vand.u32 2147483647, %v878_v49  ;;  %vm885_vm13 = vcmp.eq.s32.totalorder %v1728_v13, 1  ;;  %vm888_vm11 = vmxor %vm304_vm2, %vm886_vm5 }
 0x2c4   : > { %v802_v27 = vsub.f32 %v1655_v48, %v790_v12  ;;  %v900_v28 = vsub.f32 1.0, %v882_v54  ;;  %vm895_vm9 = vcmp.eq.s32.totalorder %v1728_v13, 2  ;;  %v938_v41 = vsub.f32 %v1628_v36, %v922_v56  ;;  %vm887_vm6 = vmxor %vm303_vm1, %vm885_vm13 }
 0x2c5   : > { %v861_v14 = vadd.f32 %v859_v23, %v843_v17  ;;  %v889_v61 = vsub.f32 1.0, %v879_v55  ;;  %v883_v62 = vand.u32 2147483647, %v877_v59  ;;  %vm906_vm12 = vcmp.eq.s32.totalorder %v1715_v10, 3 }
 0x2c6   : > { %v808_v45 = vand.u32 2147483647, %v802_v27  ;;  %v899_v40 = vsub.f32 1.0, %v881_v38  ;;  %v910_v5 = vsub.f32 1.0, %v884_v58  ;;  %vm905_vm5 = vcmp.eq.s32.totalorder %v1728_v13, 3  ;;  %vm908_vm8 = vmxor %vm308_vm15, %vm906_vm12 }
 0x2c7   : > { %v869_v25 = vmul.f32 %v867_v31, %v861_v14  ;;  %v892_v36 = vsel %vm888_vm11, %v890_v15, %v880_v44  ;;  %v939_v10 = vsub.f32 %v1626_v35, %v2044_v11  ;;  %v944_v17 = vand.u32 2147483647, %v938_v41  ;;  %vm907_vm13 = vmxor %vm307_vm14, %vm905_vm5  ;;  %v1282_v41 = vpop.eup %1281 }
 0x2c8   : > { %v858_v18 = vsub.f32 1.0, %v808_v45  ;;  %v909_v12 = vsub.f32 1.0, %v883_v62  ;;  %v891_v51 = vsel %vm887_vm6, %v889_v61, %v879_v55  ;;  %v912_v31 = vsel %vm908_vm8, %v910_v5, %v884_v58 }
 0x2c9   : > { %v2095_v6 = vadd.f32 %v869_v25, %v677_v4  ;;  %vm954_vm11 = vcmp.ne.s32.totalorder %v2004_v16, 0  ;;  %v941_v35 = vsub.f32 %v1644_v43, %v2061_v20  ;;  %v958_v11 = vsub.f32 1.0, %v944_v17 }
 0x2ca   : > { %v860_v52 = vsel %vm856_vm7, %v858_v18, %v808_v45  ;;  %vm897_vm7 = vmxor %vm305_vm3, %vm895_vm9  ;;  %v945_v45 = vand.u32 2147483647, %v939_v10  ;;  %v911_v50 = vsel %vm907_vm13, %v909_v12, %v883_v62  ;;  %vm953_vm9 = vcmp.ne.s32.totalorder %v2008_v29, 0 }
 0x2cb   : > { %v862_v9 = vadd.f32 %v860_v52, %v844_v46  ;;  %v920_v32 = vpop.permute.xlu0 %919  ;;  %v901_v23 = vsel %vm897_vm7, %v899_v40, %v881_v38  ;;  %v980_v14 = vpop.permute.xlu1 %979  ;;  %vm956_vm6 = vmxor %vm304_vm2, %vm954_vm11  ;;  %vm967_vm7 = vcmp.ne.s32.totalorder %v2017_v26, 0  ;;  %v992_v26 = vmul.f32 %v2091_v47, %v2085_v33 }
 0x2cc   : > { %v937_v2 = vsub.f32 %v1624_v34, %v920_v32  ;;  %v903_v25 = vadd.f32 %v901_v23, %v891_v51  ;;  %vm982_vm12 = vcmp.ne.s32.totalorder %v980_v14, 0  ;;  %vm955_vm5 = vmxor %vm303_vm1, %vm953_vm9  ;;  %v971_v43 = vsub.f32 1.0, %v945_v45 }
 0x2cd   : > { %v870_v42 = vmul.f32 %v868_v30, %v862_v9  ;;  %v960_v29 = vsel %vm956_vm6, %v958_v11, %v944_v17  ;;  %vm969_vm2 = vmxor %vm305_vm3, %vm967_vm7  ;;  %vm2217_vm3 = vcmask 130048  }
 0x2ce   : > { %v943_v34 = vand.u32 2147483647, %v937_v2  ;;  %v913_v20 = vadd.f32 %v911_v50, %v903_v25 }
 0x2cf   : > { %v2110_v21 = vadd.f32 %v870_v42, %v678_v39  ;;  %v973_v39 = vsel %vm969_vm2, %v971_v43, %v945_v45 }
 0x2d0   : > { %v957_v18 = vsub.f32 1.0, %v943_v34  ;;  %v915_v53 = vmul.f32 %v2071_v63, %v913_v20 }
 0x2d2   : > { %v959_v9 = vsel %vm955_vm5, %v957_v18, %v943_v34 }
 0x2d3   : > { %v926_v60 = vpop.permute.xlu0 %925  ;;  %v975_v1 = vadd.f32 %v973_v39, %v959_v9 }
 0x2d4   : > { %v940_v8 = vsub.f32 %v1630_v37, %v926_v60  ;;  %v902_v37 = vsel %vm898_vm10, %v900_v28, %v882_v54  ;;  %vm970_vm10 = vmxor %vm306_vm4, %vm968_vm0  ;;  %v991_v54 = vmul.f32 %v2071_v63, %v2085_v33 }
 0x2d5   : > { %v904_v13 = vadd.f32 %v902_v37, %v892_v36  ;;  %vm984_vm0 = vmxor %vm308_vm15, %vm982_vm12 }
 0x2d6   : > { %v946_v3 = vand.u32 2147483647, %v940_v8  ;;  %vm2218_vm15 = vmmov %vm2217_vm3  ;;  %v1011_v8 = vmul.f32 11160.0, %v1282_v41 }
 0x2d7   : > { %v914_v57 = vadd.f32 %v912_v31, %v904_v13 }
 0x2d8   : > { %v972_v27 = vsub.f32 1.0, %v946_v3  ;;  %v1012_v63 = vsub.f32 1.0, %v1011_v8 }
 0x2d9   : > { %v916_v16 = vmul.f32 %v2091_v47, %v914_v57  ;;  %v917_v47 = vadd.f32 %v915_v53, %v2095_v6 }
 0x2da   : > { %v974_v46 = vsel %vm970_vm10, %v972_v27, %v946_v3  ;;  %v1013_v61 = vmul.f32 %v1282_v41, %v1012_v63 }
 0x2db   : > { %v930_v19 = vpop.permute.xlu0 %929  ;;  %v976_v30 = vadd.f32 %v974_v46, %v960_v29  ;;  %v918_v59 = vadd.f32 %v916_v16, %v2110_v21 }
 0x2dc   : > { %v942_v4 = vsub.f32 %v1655_v48, %v930_v19  ;;  %v947_v48 = vand.u32 2147483647, %v941_v35  ;;  %v1014_v2 = vadd.f32 %v1282_v41, %v1013_v61 }
 0x2de   : > { %v948_v52 = vand.u32 2147483647, %v942_v4  ;;  %v985_v42 = vsub.f32 1.0, %v947_v48 }
 0x2e0   : > { %v986_v24 = vsub.f32 1.0, %v948_v52 }
 0x2e2   : > { %v988_v32 = vsel %vm984_vm0, %v986_v24, %v948_v52 }
 0x2e3   : > { %v990_v7 = vadd.f32 %v988_v32, %v976_v30  ;;  %v978_v22 = vpop.permute.xlu0 %977 }
 0x2e4   : > { %vm981_vm1 = vcmp.ne.s32.totalorder %v978_v22, 0 }
 0x2e5   : > { %vm983_vm4 = vmxor %vm307_vm14, %vm981_vm1  ;;  %v994_v44 = vmul.f32 %v992_v26, %v990_v7  ;;  %vm1015_vm14 = vweird.f32 %v1282_v41 }
 0x2e6   : > { %v987_v49 = vsel %vm983_vm4, %v985_v42, %v947_v48  ;;  %v1016_v36 = vsel %vm1015_vm14, %v1282_v41, %v1014_v2 }
 0x2e7   : > { %v989_v55 = vadd.f32 %v987_v49, %v975_v1  ;;  %v996_v38 = vadd.f32 %v994_v44, %v918_v59 }
 0x2e9   : > { %v993_v56 = vmul.f32 %v991_v54, %v989_v55  ;;  %v998_v60 = vsel %vm2218_vm15, %v996_v38, 0.0 }
 0x2eb   : > { %v995_v15 = vadd.f32 %v993_v56, %v917_v47 }
 0x2ed   : > { %v997_v58 = vsel %vm2217_vm3, %v995_v15, 0.0 }
 0x2ee   : > { %v999_v28 = vadd.f32 %v998_v60, %v997_v58 }
 0x2f0   : > { %1000 = vadd.xlane.f32.xlu0 %v999_v28 }
 0x363   : > { %v1001_v33 = vpop.xlane.xlu0 %1000 }
 0x364   : > { %v1002_v21 = vrot.slane %v1001_v33, 4 }
 0x366   : > { %v1003_v6 = vadd.f32 %v1002_v21, %v1001_v33 }
 0x368   : > { %v1004_v62 = vrot.slane %v1003_v6, 2 }
 0x36a   : > { %v1005_v40 = vadd.f32 %v1004_v62, %v1003_v6 }
 0x36c   : > { %v1006_v3 = vrot.slane %v1005_v40, 1 }
 0x36e   : > { %v1007_v5 = vadd.f32 %v1006_v3, %v1005_v40 }
 0x370   : > { %1186 = vpush %v1007_v5 }
 0x371   : > { %1188 = vpush %v1016_v36 }
 0x3a1   : > { %s1187_s14 = spop %1186 }
 0x3a2   : > { %s1009_s3 = smul.f32 2.0, %s1187_s14  ;;  %s1189_s28 = spop %1188 }
 0x3a4   : > { %s1018_s30 = smul.f32 %s1189_s28, %s1009_s3 }
 0x3a6   : > { %s1019_s5 = sadd.f32 %s1018_s30, %s513_s27 }
 0x3a8   : > { %v1020_v37 = vstv %s1019_s5 }
 0x3a9   : > { %1021 = vst [vmem:[%s205_s6] sm:$0xff] %v1020_v37 }
 0x3aa   : > { %1370 = shalt.err (!%p1367_p0)
}
 0x3ab   : > { %1194 = dma.vmem_to_hbm [thread:$0]  (%p1492_p11), %s1036_s7, 128, %s1038_s29, %s1023_s13  }
 0x3ac PF: > { %s1049_s23 = sand.u32 1, %s1401_s9   ;;  %p2219_p1 = scmp.ge.s32.totalorder %s1413_s12, 2 }
 0x3ad   : > { %s1050_s14 = scalar_lea.sflag [#allocation4], %s1049_s23 }
 0x3ae   : > { %p1204_p4 = pnand %p2219_p1, %p1496_p12 }
 0x3b0   : > { %p1205_p7 = pneg %p1204_p4 }
 0x3b2   : > { %1396 = dma.done.wait (%p1205_p7), %s1050_s14, 128  }
 0x3b3   : > { %1398 = vsyncadd (%p1205_p7), %s1050_s14, 4294967168  ;;  %p18_p5 = scmp.ge.s32.totalorder %s1467_s15, 4   ;;  %s2220_s9 = smov %s1405_s10 }
 0x3b4   : > { %s2221_s10 = smov %s1409_s11  ;;  %s2222_s11 = smov %s1479_s18 }
 0x3b5   : > { %s2223_s12 = smov %s1467_s15  ;;  %20 = sbr.rel (!%p18_p5) target bundleno = 9 (0x9), region = 86 }
 0x3ba   :  { %1056 = vsyncpa [#allocation3], 1 }
 0x3bb   :  { %1058 = vsyncpa [#allocation3 + $0x1], 1 }
 0x3bc   :  { %1059 = vsyncpa [#allocation6], 1 }
 0x3bd   :  { %1061 = vsyncpa [#allocation6 + $0x1], 1 }
 0x3be   :  { %1062 = vsyncpa [#allocation4], 1 }
 0x3bf   :  { %1064 = vsyncpa [#allocation4 + $0x1], 1 }

</bundles_post_ra>
